<compile_context>
chip_gen: v5e
topology: v5e:2x2
jax: 0.10.0
libtpu: 0.0.40
codegen_flags: <defaults>
</compile_context>

<pallas_src>
import functools

import jax
import jax.numpy as jnp
from jax import lax
from jax.experimental import pallas as pl
from jax.experimental.pallas import tpu as pltpu


def bidir_lstm_kernel(
    x_ref,      # (T*B, 2*nIn) bf16   row k*B+b holds [x[k,b] | x[T-1-k,b]]
    wih_ref,    # (2*nIn, 8H)  bf16   block-diag input weights, gate-interleaved cols
    b_ref,      # (1, 8H)      f32    folded b_ih + b_hh, gate-interleaved
    whh_ref,    # (2H, 8H)     bf16   block-diag recurrent weights, both directions
    wemb_ref,   # (2H, No)     bf16   embedding weights (nOut lane-padded to No)
    bemb_ref,   # (1, No)      f32
    out_ref,    # (T, B, No)   f32
    gx_ref,     # scratch VMEM (T, B, 8H) f32   hoisted input-gate pre-activations
    hf_ref,     # scratch VMEM (T, B, H)  bf16  forward hidden states (time-aligned)
    hb_ref,     # scratch VMEM (T, B, H)  bf16  backward hidden states (time-aligned)
):
    T, B, _ = out_ref.shape
    H2 = whh_ref.shape[0]          # 2H
    H = H2 // 2
    G8 = whh_ref.shape[1]          # 8H

    # ---- hoisted input projection: ONE matmul covers both directions/time orders ----
    gx = (
        jnp.dot(x_ref[...], wih_ref[...], preferred_element_type=jnp.float32)
        + b_ref[...]
    )                                           # (T*B, 8H) f32
    gx_ref[...] = gx.reshape(T, B, G8)

    whh = whh_ref[...]                          # hoisted out of the loop

    # lane mask for the tanh ("g") gate region [4H, 6H); hoisted broadcast
    lane = lax.broadcasted_iota(jnp.int32, (B, G8), 1)
    tanh_region = (lane >= 4 * H) & (lane < 6 * H)

    # ---- fused fwd+bwd recurrence: one MXU dot + 3 full-width EUP passes per step ----
    def step(k, carry):
        h_cat, c_cat = carry                    # (B, 2H) bf16 / f32
        gates = (
            jnp.dot(h_cat, whh, preferred_element_type=jnp.float32) + gx_ref[k]
        )                                        # (B, 8H) f32
        act_sig = 0.5 * jnp.tanh(0.5 * gates) + 0.5   # sigmoid via a single tanh
        act_tanh = jnp.tanh(gates)
        act = jnp.where(tanh_region, act_tanh, act_sig)
        i = act[:, 0 * H2:1 * H2]                # [i_f | i_b]
        f = act[:, 1 * H2:2 * H2]                # [f_f | f_b]
        g = act[:, 2 * H2:3 * H2]                # [g_f | g_b]
        o = act[:, 3 * H2:4 * H2]                # [o_f | o_b]
        c_cat = f * c_cat + i * g
        h_cat = (o * jnp.tanh(c_cat)).astype(jnp.bfloat16)  # bf16 feeds next MXU dot
        hf_ref[k] = h_cat[:, :H]                 # fwd hidden at time k
        hb_ref[T - 1 - k] = h_cat[:, H:]         # bwd hidden at time T-1-k
        return (h_cat, c_cat)

    h0 = jnp.zeros((B, H2), jnp.bfloat16)
    c0 = jnp.zeros((B, H2), jnp.float32)
    lax.fori_loop(0, T, step, (h0, c0), unroll=True)

    # ---- single bulk embedding matmul over all timesteps, lane-dense store ----
    hf = hf_ref[...].reshape(T * B, H)
    hb = hb_ref[...].reshape(T * B, H)
    hcat = jnp.concatenate([hf, hb], axis=-1)    # (T*B, 2H), PyTorch [fwd | bwd]
    y = (
        jnp.dot(hcat, wemb_ref[...], preferred_element_type=jnp.float32)
        + bemb_ref[...]
    )                                            # (T*B, No) f32
    out_ref[...] = y.reshape(T, B, -1).astype(out_ref.dtype)


def _interleave_gates(a, b, H):
    """Concat a, b (..., 4H) per gate -> (..., 8H) = [a_i b_i a_f b_f a_g b_g a_o b_o]."""
    lead = a.shape[:-1]
    a4 = a.reshape(*lead, 4, H)
    b4 = b.reshape(*lead, 4, H)
    return jnp.stack([a4, b4], axis=-2).reshape(*lead, 8 * H)


def bidirectional_lstm(x, p):
    """x: (T, B, nIn) float32.  p: dict of PyTorch-layout parameters."""
    T, B, nIn = x.shape
    H4 = p["w_ih_f"].shape[0]
    H = H4 // 4
    nOut = p["w_emb"].shape[0]

    bf16 = jnp.bfloat16
    f32 = jnp.float32

    # pad batch to a multiple of 8 sublanes; pad output lanes to a multiple of 128
    Bp = max(8, -(-B // 8) * 8)
    if Bp != B:
        x = jnp.pad(x, ((0, 0), (0, Bp - B), (0, 0)))
    No = max(128, -(-nOut // 128) * 128)

    # ---- weight glue (plain JAX, trace-time only) ----
    zin = jnp.zeros((nIn, 4 * H), f32)
    wih_block = jnp.concatenate(
        [_interleave_gates(p["w_ih_f"].T, zin, H),
         _interleave_gates(zin, p["w_ih_b"].T, H)], axis=0).astype(bf16)     # (2*nIn, 8H)
    zh = jnp.zeros((H, 4 * H), f32)
    whh_block = jnp.concatenate(
        [_interleave_gates(p["w_hh_f"].T, zh, H),
         _interleave_gates(zh, p["w_hh_b"].T, H)], axis=0).astype(bf16)      # (2H, 8H)
    b_cat = _interleave_gates(
        p["b_ih_f"] + p["b_hh_f"], p["b_ih_b"] + p["b_hh_b"], H
    ).reshape(1, 8 * H).astype(f32)                                          # (1, 8H)
    wemb = jnp.pad(p["w_emb"].T, ((0, 0), (0, No - nOut))).astype(bf16)      # (2H, No)
    b_emb = jnp.pad(p["b_emb"], (0, No - nOut)).reshape(1, No).astype(f32)   # (1, No)

    # per iteration row k: [x[k] | x[T-1-k]] so one block-diag matmul aligns both chains
    x2 = jnp.concatenate([x, x[::-1]], axis=-1).reshape(T * Bp, 2 * nIn).astype(bf16)

    vmem = functools.partial(pl.BlockSpec, memory_space=pltpu.MemorySpace.VMEM)
    inputs = (x2, wih_block, b_cat, whh_block, wemb, b_emb)

    out = pl.pallas_call(
        bidir_lstm_kernel,
        out_shape=jax.ShapeDtypeStruct((T, Bp, No), jnp.float32),
        in_specs=[vmem() for _ in inputs],
        out_specs=vmem(),
        scratch_shapes=[
            pltpu.VMEM((T, Bp, 8 * H), jnp.float32),   # hoisted input gates
            pltpu.VMEM((T, Bp, H), jnp.bfloat16),      # fwd hidden states
            pltpu.VMEM((T, Bp, H), jnp.bfloat16),      # bwd hidden states
        ],
    )(*inputs)
    return out[:, :B, :nOut]


def reference(x, p):
    """Pure-JAX f32 reference matching PyTorch nn.LSTM(bidirectional) + Linear."""
    T, B, _ = x.shape
    H4 = p["w_ih_f"].shape[0]
    H = H4 // 4

    def run_dir(w_ih, w_hh, b_ih, b_hh, xs):
        def step(carry, x_t):
            h, c = carry
            g = x_t @ w_ih.T + b_ih + h @ w_hh.T + b_hh
            i = jax.nn.sigmoid(g[:, :H])
            f = jax.nn.sigmoid(g[:, H:2 * H])
            gg = jnp.tanh(g[:, 2 * H:3 * H])
            o = jax.nn.sigmoid(g[:, 3 * H:])
            c = f * c + i * gg
            h = o * jnp.tanh(c)
            return (h, c), h

        h0 = jnp.zeros((B, H), jnp.float32)
        _, hs = lax.scan(step, (h0, h0), xs)
        return hs

    hf = run_dir(p["w_ih_f"], p["w_hh_f"], p["b_ih_f"], p["b_hh_f"], x)
    hb = run_dir(p["w_ih_b"], p["w_hh_b"], p["b_ih_b"], p["b_hh_b"], x[::-1])[::-1]
    rec = jnp.concatenate([hf, hb], axis=-1)            # (T, B, 2H)
    out = rec.reshape(T * B, 2 * H) @ p["w_emb"].T + p["b_emb"]
    return out.reshape(T, B, -1)


if __name__ == "__main__":
    # small shapes consistent with the module: seq T=8, batch b=2,
    # nIn=16, nHidden=32, nOut=16
    T, B, nIn, H, nOut = 8, 2, 16, 32, 16

    key = jax.random.PRNGKey(0)
    keys = jax.random.split(key, 11)
    bound = 1.0 / float(H) ** 0.5

    def u(k, shape):
        return jax.random.uniform(k, shape, jnp.float32, -bound, bound)

    params = {
        # forward-direction LSTM params (PyTorch layout: (4H, nIn), (4H, H), (4H,))
        "w_ih_f": u(keys[0], (4 * H, nIn)),
        "w_hh_f": u(keys[1], (4 * H, H)),
        "b_ih_f": u(keys[2], (4 * H,)),
        "b_hh_f": u(keys[3], (4 * H,)),
        # reverse-direction LSTM params
        "w_ih_b": u(keys[4], (4 * H, nIn)),
        "w_hh_b": u(keys[5], (4 * H, H)),
        "b_ih_b": u(keys[6], (4 * H,)),
        "b_hh_b": u(keys[7], (4 * H,)),
        # embedding Linear(2H -> nOut), PyTorch layout (nOut, 2H)
        "w_emb": u(keys[8], (nOut, 2 * H)),
        "b_emb": u(keys[9], (nOut,)),
    }

    x = jax.random.normal(keys[10], (T, B, nIn), jnp.float32)

    out = bidirectional_lstm(x, params)
    jax.block_until_ready(out)

    ref = reference(x, params)
    assert out.shape == (T, B, nOut)
    # bf16 MXU operands / bf16 hidden carry: intentional precision trade -> loose tol
    assert jnp.allclose(out, ref, atol=3e-2, rtol=3e-2), (
        float(jnp.max(jnp.abs(out - ref)))
    )

    print("KERNEL_OK")
</pallas_src>

<mosaic_0001>
module attributes {stable_mosaic.version = 11 : i64} {
  func.func @bidir_lstm_kernel(%arg0: memref<64x32xbf16, #tpu.memory_space<vmem>>, %arg1: memref<32x256xbf16, #tpu.memory_space<vmem>>, %arg2: memref<1x256xf32, #tpu.memory_space<vmem>>, %arg3: memref<64x256xbf16, #tpu.memory_space<vmem>>, %arg4: memref<64x128xbf16, #tpu.memory_space<vmem>>, %arg5: memref<1x128xf32, #tpu.memory_space<vmem>>, %arg6: memref<8x8x128xf32, #tpu.memory_space<vmem>>, %arg7: memref<8x8x256xf32, #tpu.memory_space<vmem>>, %arg8: memref<8x8x32xbf16, #tpu.memory_space<vmem>>, %arg9: memref<8x8x32xbf16, #tpu.memory_space<vmem>>) attributes {dimension_semantics = [], scalar_prefetch = 0 : i64, scratch_operands = 3 : i64, tpu.core_type = #tpu.core_type<tc>} {
    %c0 = arith.constant 0 : index
    %c0_0 = arith.constant 0 : index
    %0 = vector.load %arg0[%c0, %c0_0] : memref<64x32xbf16, #tpu.memory_space<vmem>>, vector<64x32xbf16>
    %c0_1 = arith.constant 0 : index
    %c0_2 = arith.constant 0 : index
    %1 = vector.load %arg1[%c0_1, %c0_2] : memref<32x256xbf16, #tpu.memory_space<vmem>>, vector<32x256xbf16>
    %cst = arith.constant dense<0.000000e+00> : vector<64x256xf32>
    %2 = tpu.matmul %0, %1, %cst {dimension_numbers = #tpu.dot_dimension_numbers<[1], [0], [0], [1], [0, 0, 1, 1], [], []>} : vector<64x32xbf16>, vector<32x256xbf16>, vector<64x256xf32> -> vector<64x256xf32>
    %c0_3 = arith.constant 0 : index
    %c0_4 = arith.constant 0 : index
    %3 = vector.load %arg2[%c0_3, %c0_4] : memref<1x256xf32, #tpu.memory_space<vmem>>, vector<1x256xf32>
    %4 = vector.broadcast %3 : vector<1x256xf32> to vector<64x256xf32>
    %5 = arith.addf %2, %4 : vector<64x256xf32>
    %6 = vector.shape_cast %5 : vector<64x256xf32> to vector<8x8x256xf32>
    %c0_5 = arith.constant 0 : index
    %c0_6 = arith.constant 0 : index
    %c0_7 = arith.constant 0 : index
    %7 = vector.load %arg7[%c0_5, %c0_6, %c0_7] : memref<8x8x256xf32, #tpu.memory_space<vmem>>, vector<8x8x256xf32>
    tpu.vector_store %arg7[%c0_5, %c0_6, %c0_7], %6 {strides = array<i32>} : memref<8x8x256xf32, #tpu.memory_space<vmem>>, vector<8x8x256xf32>,
    %c0_8 = arith.constant 0 : index
    %c0_9 = arith.constant 0 : index
    %8 = vector.load %arg3[%c0_8, %c0_9] : memref<64x256xbf16, #tpu.memory_space<vmem>>, vector<64x256xbf16>
    %9 = tpu.iota {dimensions = array<i32: 1>} : vector<8x256xi32>
    %c128_i32 = arith.constant 128 : i32
    %10 = vector.broadcast %c128_i32 : i32 to vector<8x256xi32>
    %11 = arith.cmpi sge, %9, %10 : vector<8x256xi32>
    %c192_i32 = arith.constant 192 : i32
    %12 = vector.broadcast %c192_i32 : i32 to vector<8x256xi32>
    %13 = arith.cmpi slt, %9, %12 : vector<8x256xi32>
    %14 = arith.andi %11, %13 : vector<8x256xi1>
    %cst_10 = arith.constant 0.000000e+00 : bf16
    %15 = vector.broadcast %cst_10 : bf16 to vector<8x64xbf16>
    %cst_11 = arith.constant 0.000000e+00 : f32
    %16 = vector.broadcast %cst_11 : f32 to vector<8x64xf32>
    %c0_i32 = arith.constant 0 : i32
    %cst_12 = arith.constant dense<0.000000e+00> : vector<8x256xf32>
    %17 = tpu.matmul %15, %8, %cst_12 {dimension_numbers = #tpu.dot_dimension_numbers<[1], [0], [0], [1], [0, 0, 1, 1], [], []>} : vector<8x64xbf16>, vector<64x256xbf16>, vector<8x256xf32> -> vector<8x256xf32>
    %18 = arith.index_cast %c0_i32 : i32 to index
    %c0_13 = arith.constant 0 : index
    %c0_14 = arith.constant 0 : index
    %19 = vector.load %arg7[%18, %c0_13, %c0_14] : memref<8x8x256xf32, #tpu.memory_space<vmem>>, vector<1x8x256xf32>
    %20 = vector.shape_cast %19 : vector<1x8x256xf32> to vector<8x256xf32>
    %21 = arith.addf %17, %20 : vector<8x256xf32>
    %cst_15 = arith.constant 5.000000e-01 : f32
    %22 = vector.broadcast %cst_15 : f32 to vector<8x256xf32>
    %23 = arith.mulf %22, %21 : vector<8x256xf32>
    %24 = math.tanh %23 : vector<8x256xf32>
    %cst_16 = arith.constant 5.000000e-01 : f32
    %25 = vector.broadcast %cst_16 : f32 to vector<8x256xf32>
    %26 = arith.mulf %25, %24 : vector<8x256xf32>
    %cst_17 = arith.constant 5.000000e-01 : f32
    %27 = vector.broadcast %cst_17 : f32 to vector<8x256xf32>
    %28 = arith.addf %26, %27 : vector<8x256xf32>
    %29 = math.tanh %21 : vector<8x256xf32>
    %30 = arith.select %14, %29, %28 : vector<8x256xi1>, vector<8x256xf32>
    %31 = vector.extract_strided_slice %30 {offsets = [0, 0], sizes = [8, 64], strides = [1, 1]} : vector<8x256xf32> to vector<8x64xf32>
    %32 = vector.extract_strided_slice %30 {offsets = [0, 64], sizes = [8, 64], strides = [1, 1]} : vector<8x256xf32> to vector<8x64xf32>
    %33 = vector.extract_strided_slice %30 {offsets = [0, 128], sizes = [8, 64], strides = [1, 1]} : vector<8x256xf32> to vector<8x64xf32>
    %34 = vector.extract_strided_slice %30 {offsets = [0, 192], sizes = [8, 64], strides = [1, 1]} : vector<8x256xf32> to vector<8x64xf32>
    %35 = arith.mulf %32, %16 : vector<8x64xf32>
    %36 = arith.mulf %31, %33 : vector<8x64xf32>
    %37 = arith.addf %35, %36 : vector<8x64xf32>
    %38 = math.tanh %37 : vector<8x64xf32>
    %39 = arith.mulf %34, %38 : vector<8x64xf32>
    %40 = arith.truncf %39 : vector<8x64xf32> to vector<8x64xbf16>
    %41 = vector.extract_strided_slice %40 {offsets = [0, 0], sizes = [8, 32], strides = [1, 1]} : vector<8x64xbf16> to vector<8x32xbf16>
    %42 = arith.index_cast %c0_i32 : i32 to index
    %c0_18 = arith.constant 0 : index
    %c0_19 = arith.constant 0 : index
    %43 = vector.load %arg8[%42, %c0_18, %c0_19] : memref<8x8x32xbf16, #tpu.memory_space<vmem>>, vector<1x8x32xbf16>
    %44 = vector.shape_cast %43 : vector<1x8x32xbf16> to vector<8x32xbf16>
    %45 = vector.shape_cast %41 : vector<8x32xbf16> to vector<1x8x32xbf16>
    tpu.vector_store %arg8[%42, %c0_18, %c0_19], %45 {strides = array<i32>} : memref<8x8x32xbf16, #tpu.memory_space<vmem>>, vector<1x8x32xbf16>,
    %46 = vector.extract_strided_slice %40 {offsets = [0, 32], sizes = [8, 32], strides = [1, 1]} : vector<8x64xbf16> to vector<8x32xbf16>
    %c7_i32 = arith.constant 7 : i32
    %47 = arith.subi %c7_i32, %c0_i32 : i32
    %48 = arith.index_cast %47 : i32 to index
    %c0_20 = arith.constant 0 : index
    %c0_21 = arith.constant 0 : index
    %49 = vector.load %arg9[%48, %c0_20, %c0_21] : memref<8x8x32xbf16, #tpu.memory_space<vmem>>, vector<1x8x32xbf16>
    %50 = vector.shape_cast %49 : vector<1x8x32xbf16> to vector<8x32xbf16>
    %51 = vector.shape_cast %46 : vector<8x32xbf16> to vector<1x8x32xbf16>
    tpu.vector_store %arg9[%48, %c0_20, %c0_21], %51 {strides = array<i32>} : memref<8x8x32xbf16, #tpu.memory_space<vmem>>, vector<1x8x32xbf16>,
    %c1_i32 = arith.constant 1 : i32
    %cst_22 = arith.constant dense<0.000000e+00> : vector<8x256xf32>
    %52 = tpu.matmul %40, %8, %cst_22 {dimension_numbers = #tpu.dot_dimension_numbers<[1], [0], [0], [1], [0, 0, 1, 1], [], []>} : vector<8x64xbf16>, vector<64x256xbf16>, vector<8x256xf32> -> vector<8x256xf32>
    %53 = arith.index_cast %c1_i32 : i32 to index
    %c0_23 = arith.constant 0 : index
    %c0_24 = arith.constant 0 : index
    %54 = vector.load %arg7[%53, %c0_23, %c0_24] : memref<8x8x256xf32, #tpu.memory_space<vmem>>, vector<1x8x256xf32>
    %55 = vector.shape_cast %54 : vector<1x8x256xf32> to vector<8x256xf32>
    %56 = arith.addf %52, %55 : vector<8x256xf32>
    %cst_25 = arith.constant 5.000000e-01 : f32
    %57 = vector.broadcast %cst_25 : f32 to vector<8x256xf32>
    %58 = arith.mulf %57, %56 : vector<8x256xf32>
    %59 = math.tanh %58 : vector<8x256xf32>
    %cst_26 = arith.constant 5.000000e-01 : f32
    %60 = vector.broadcast %cst_26 : f32 to vector<8x256xf32>
    %61 = arith.mulf %60, %59 : vector<8x256xf32>
    %cst_27 = arith.constant 5.000000e-01 : f32
    %62 = vector.broadcast %cst_27 : f32 to vector<8x256xf32>
    %63 = arith.addf %61, %62 : vector<8x256xf32>
    %64 = math.tanh %56 : vector<8x256xf32>
    %65 = arith.select %14, %64, %63 : vector<8x256xi1>, vector<8x256xf32>
    %66 = vector.extract_strided_slice %65 {offsets = [0, 0], sizes = [8, 64], strides = [1, 1]} : vector<8x256xf32> to vector<8x64xf32>
    %67 = vector.extract_strided_slice %65 {offsets = [0, 64], sizes = [8, 64], strides = [1, 1]} : vector<8x256xf32> to vector<8x64xf32>
    %68 = vector.extract_strided_slice %65 {offsets = [0, 128], sizes = [8, 64], strides = [1, 1]} : vector<8x256xf32> to vector<8x64xf32>
    %69 = vector.extract_strided_slice %65 {offsets = [0, 192], sizes = [8, 64], strides = [1, 1]} : vector<8x256xf32> to vector<8x64xf32>
    %70 = arith.mulf %67, %37 : vector<8x64xf32>
    %71 = arith.mulf %66, %68 : vector<8x64xf32>
    %72 = arith.addf %70, %71 : vector<8x64xf32>
    %73 = math.tanh %72 : vector<8x64xf32>
    %74 = arith.mulf %69, %73 : vector<8x64xf32>
    %75 = arith.truncf %74 : vector<8x64xf32> to vector<8x64xbf16>
    %76 = vector.extract_strided_slice %75 {offsets = [0, 0], sizes = [8, 32], strides = [1, 1]} : vector<8x64xbf16> to vector<8x32xbf16>
    %77 = arith.index_cast %c1_i32 : i32 to index
    %c0_28 = arith.constant 0 : index
    %c0_29 = arith.constant 0 : index
    %78 = vector.load %arg8[%77, %c0_28, %c0_29] : memref<8x8x32xbf16, #tpu.memory_space<vmem>>, vector<1x8x32xbf16>
    %79 = vector.shape_cast %78 : vector<1x8x32xbf16> to vector<8x32xbf16>
    %80 = vector.shape_cast %76 : vector<8x32xbf16> to vector<1x8x32xbf16>
    tpu.vector_store %arg8[%77, %c0_28, %c0_29], %80 {strides = array<i32>} : memref<8x8x32xbf16, #tpu.memory_space<vmem>>, vector<1x8x32xbf16>,
    %81 = vector.extract_strided_slice %75 {offsets = [0, 32], sizes = [8, 32], strides = [1, 1]} : vector<8x64xbf16> to vector<8x32xbf16>
    %c7_i32_30 = arith.constant 7 : i32
    %82 = arith.subi %c7_i32_30, %c1_i32 : i32
    %83 = arith.index_cast %82 : i32 to index
    %c0_31 = arith.constant 0 : index
    %c0_32 = arith.constant 0 : index
    %84 = vector.load %arg9[%83, %c0_31, %c0_32] : memref<8x8x32xbf16, #tpu.memory_space<vmem>>, vector<1x8x32xbf16>
    %85 = vector.shape_cast %84 : vector<1x8x32xbf16> to vector<8x32xbf16>
    %86 = vector.shape_cast %81 : vector<8x32xbf16> to vector<1x8x32xbf16>
    tpu.vector_store %arg9[%83, %c0_31, %c0_32], %86 {strides = array<i32>} : memref<8x8x32xbf16, #tpu.memory_space<vmem>>, vector<1x8x32xbf16>,
    %c2_i32 = arith.constant 2 : i32
    %cst_33 = arith.constant dense<0.000000e+00> : vector<8x256xf32>
    %87 = tpu.matmul %75, %8, %cst_33 {dimension_numbers = #tpu.dot_dimension_numbers<[1], [0], [0], [1], [0, 0, 1, 1], [], []>} : vector<8x64xbf16>, vector<64x256xbf16>, vector<8x256xf32> -> vector<8x256xf32>
    %88 = arith.index_cast %c2_i32 : i32 to index
    %c0_34 = arith.constant 0 : index
    %c0_35 = arith.constant 0 : index
    %89 = vector.load %arg7[%88, %c0_34, %c0_35] : memref<8x8x256xf32, #tpu.memory_space<vmem>>, vector<1x8x256xf32>
    %90 = vector.shape_cast %89 : vector<1x8x256xf32> to vector<8x256xf32>
    %91 = arith.addf %87, %90 : vector<8x256xf32>
    %cst_36 = arith.constant 5.000000e-01 : f32
    %92 = vector.broadcast %cst_36 : f32 to vector<8x256xf32>
    %93 = arith.mulf %92, %91 : vector<8x256xf32>
    %94 = math.tanh %93 : vector<8x256xf32>
    %cst_37 = arith.constant 5.000000e-01 : f32
    %95 = vector.broadcast %cst_37 : f32 to vector<8x256xf32>
    %96 = arith.mulf %95, %94 : vector<8x256xf32>
    %cst_38 = arith.constant 5.000000e-01 : f32
    %97 = vector.broadcast %cst_38 : f32 to vector<8x256xf32>
    %98 = arith.addf %96, %97 : vector<8x256xf32>
    %99 = math.tanh %91 : vector<8x256xf32>
    %100 = arith.select %14, %99, %98 : vector<8x256xi1>, vector<8x256xf32>
    %101 = vector.extract_strided_slice %100 {offsets = [0, 0], sizes = [8, 64], strides = [1, 1]} : vector<8x256xf32> to vector<8x64xf32>
    %102 = vector.extract_strided_slice %100 {offsets = [0, 64], sizes = [8, 64], strides = [1, 1]} : vector<8x256xf32> to vector<8x64xf32>
    %103 = vector.extract_strided_slice %100 {offsets = [0, 128], sizes = [8, 64], strides = [1, 1]} : vector<8x256xf32> to vector<8x64xf32>
    %104 = vector.extract_strided_slice %100 {offsets = [0, 192], sizes = [8, 64], strides = [1, 1]} : vector<8x256xf32> to vector<8x64xf32>
    %105 = arith.mulf %102, %72 : vector<8x64xf32>
    %106 = arith.mulf %101, %103 : vector<8x64xf32>
    %107 = arith.addf %105, %106 : vector<8x64xf32>
    %108 = math.tanh %107 : vector<8x64xf32>
    %109 = arith.mulf %104, %108 : vector<8x64xf32>
    %110 = arith.truncf %109 : vector<8x64xf32> to vector<8x64xbf16>
    %111 = vector.extract_strided_slice %110 {offsets = [0, 0], sizes = [8, 32], strides = [1, 1]} : vector<8x64xbf16> to vector<8x32xbf16>
    %112 = arith.index_cast %c2_i32 : i32 to index
    %c0_39 = arith.constant 0 : index
    %c0_40 = arith.constant 0 : index
    %113 = vector.load %arg8[%112, %c0_39, %c0_40] : memref<8x8x32xbf16, #tpu.memory_space<vmem>>, vector<1x8x32xbf16>
    %114 = vector.shape_cast %113 : vector<1x8x32xbf16> to vector<8x32xbf16>
    %115 = vector.shape_cast %111 : vector<8x32xbf16> to vector<1x8x32xbf16>
    tpu.vector_store %arg8[%112, %c0_39, %c0_40], %115 {strides = array<i32>} : memref<8x8x32xbf16, #tpu.memory_space<vmem>>, vector<1x8x32xbf16>,
    %116 = vector.extract_strided_slice %110 {offsets = [0, 32], sizes = [8, 32], strides = [1, 1]} : vector<8x64xbf16> to vector<8x32xbf16>
    %c7_i32_41 = arith.constant 7 : i32
    %117 = arith.subi %c7_i32_41, %c2_i32 : i32
    %118 = arith.index_cast %117 : i32 to index
    %c0_42 = arith.constant 0 : index
    %c0_43 = arith.constant 0 : index
    %119 = vector.load %arg9[%118, %c0_42, %c0_43] : memref<8x8x32xbf16, #tpu.memory_space<vmem>>, vector<1x8x32xbf16>
    %120 = vector.shape_cast %119 : vector<1x8x32xbf16> to vector<8x32xbf16>
    %121 = vector.shape_cast %116 : vector<8x32xbf16> to vector<1x8x32xbf16>
    tpu.vector_store %arg9[%118, %c0_42, %c0_43], %121 {strides = array<i32>} : memref<8x8x32xbf16, #tpu.memory_space<vmem>>, vector<1x8x32xbf16>,
    %c3_i32 = arith.constant 3 : i32
    %cst_44 = arith.constant dense<0.000000e+00> : vector<8x256xf32>
    %122 = tpu.matmul %110, %8, %cst_44 {dimension_numbers = #tpu.dot_dimension_numbers<[1], [0], [0], [1], [0, 0, 1, 1], [], []>} : vector<8x64xbf16>, vector<64x256xbf16>, vector<8x256xf32> -> vector<8x256xf32>
    %123 = arith.index_cast %c3_i32 : i32 to index
    %c0_45 = arith.constant 0 : index
    %c0_46 = arith.constant 0 : index
    %124 = vector.load %arg7[%123, %c0_45, %c0_46] : memref<8x8x256xf32, #tpu.memory_space<vmem>>, vector<1x8x256xf32>
    %125 = vector.shape_cast %124 : vector<1x8x256xf32> to vector<8x256xf32>
    %126 = arith.addf %122, %125 : vector<8x256xf32>
    %cst_47 = arith.constant 5.000000e-01 : f32
    %127 = vector.broadcast %cst_47 : f32 to vector<8x256xf32>
    %128 = arith.mulf %127, %126 : vector<8x256xf32>
    %129 = math.tanh %128 : vector<8x256xf32>
    %cst_48 = arith.constant 5.000000e-01 : f32
    %130 = vector.broadcast %cst_48 : f32 to vector<8x256xf32>
    %131 = arith.mulf %130, %129 : vector<8x256xf32>
    %cst_49 = arith.constant 5.000000e-01 : f32
    %132 = vector.broadcast %cst_49 : f32 to vector<8x256xf32>
    %133 = arith.addf %131, %132 : vector<8x256xf32>
    %134 = math.tanh %126 : vector<8x256xf32>
    %135 = arith.select %14, %134, %133 : vector<8x256xi1>, vector<8x256xf32>
    %136 = vector.extract_strided_slice %135 {offsets = [0, 0], sizes = [8, 64], strides = [1, 1]} : vector<8x256xf32> to vector<8x64xf32>
    %137 = vector.extract_strided_slice %135 {offsets = [0, 64], sizes = [8, 64], strides = [1, 1]} : vector<8x256xf32> to vector<8x64xf32>
    %138 = vector.extract_strided_slice %135 {offsets = [0, 128], sizes = [8, 64], strides = [1, 1]} : vector<8x256xf32> to vector<8x64xf32>
    %139 = vector.extract_strided_slice %135 {offsets = [0, 192], sizes = [8, 64], strides = [1, 1]} : vector<8x256xf32> to vector<8x64xf32>
    %140 = arith.mulf %137, %107 : vector<8x64xf32>
    %141 = arith.mulf %136, %138 : vector<8x64xf32>
    %142 = arith.addf %140, %141 : vector<8x64xf32>
    %143 = math.tanh %142 : vector<8x64xf32>
    %144 = arith.mulf %139, %143 : vector<8x64xf32>
    %145 = arith.truncf %144 : vector<8x64xf32> to vector<8x64xbf16>
    %146 = vector.extract_strided_slice %145 {offsets = [0, 0], sizes = [8, 32], strides = [1, 1]} : vector<8x64xbf16> to vector<8x32xbf16>
    %147 = arith.index_cast %c3_i32 : i32 to index
    %c0_50 = arith.constant 0 : index
    %c0_51 = arith.constant 0 : index
    %148 = vector.load %arg8[%147, %c0_50, %c0_51] : memref<8x8x32xbf16, #tpu.memory_space<vmem>>, vector<1x8x32xbf16>
    %149 = vector.shape_cast %148 : vector<1x8x32xbf16> to vector<8x32xbf16>
    %150 = vector.shape_cast %146 : vector<8x32xbf16> to vector<1x8x32xbf16>
    tpu.vector_store %arg8[%147, %c0_50, %c0_51], %150 {strides = array<i32>} : memref<8x8x32xbf16, #tpu.memory_space<vmem>>, vector<1x8x32xbf16>,
    %151 = vector.extract_strided_slice %145 {offsets = [0, 32], sizes = [8, 32], strides = [1, 1]} : vector<8x64xbf16> to vector<8x32xbf16>
    %c7_i32_52 = arith.constant 7 : i32
    %152 = arith.subi %c7_i32_52, %c3_i32 : i32
    %153 = arith.index_cast %152 : i32 to index
    %c0_53 = arith.constant 0 : index
    %c0_54 = arith.constant 0 : index
    %154 = vector.load %arg9[%153, %c0_53, %c0_54] : memref<8x8x32xbf16, #tpu.memory_space<vmem>>, vector<1x8x32xbf16>
    %155 = vector.shape_cast %154 : vector<1x8x32xbf16> to vector<8x32xbf16>
    %156 = vector.shape_cast %151 : vector<8x32xbf16> to vector<1x8x32xbf16>
    tpu.vector_store %arg9[%153, %c0_53, %c0_54], %156 {strides = array<i32>} : memref<8x8x32xbf16, #tpu.memory_space<vmem>>, vector<1x8x32xbf16>,
    %c4_i32 = arith.constant 4 : i32
    %cst_55 = arith.constant dense<0.000000e+00> : vector<8x256xf32>
    %157 = tpu.matmul %145, %8, %cst_55 {dimension_numbers = #tpu.dot_dimension_numbers<[1], [0], [0], [1], [0, 0, 1, 1], [], []>} : vector<8x64xbf16>, vector<64x256xbf16>, vector<8x256xf32> -> vector<8x256xf32>
    %158 = arith.index_cast %c4_i32 : i32 to index
    %c0_56 = arith.constant 0 : index
    %c0_57 = arith.constant 0 : index
    %159 = vector.load %arg7[%158, %c0_56, %c0_57] : memref<8x8x256xf32, #tpu.memory_space<vmem>>, vector<1x8x256xf32>
    %160 = vector.shape_cast %159 : vector<1x8x256xf32> to vector<8x256xf32>
    %161 = arith.addf %157, %160 : vector<8x256xf32>
    %cst_58 = arith.constant 5.000000e-01 : f32
    %162 = vector.broadcast %cst_58 : f32 to vector<8x256xf32>
    %163 = arith.mulf %162, %161 : vector<8x256xf32>
    %164 = math.tanh %163 : vector<8x256xf32>
    %cst_59 = arith.constant 5.000000e-01 : f32
    %165 = vector.broadcast %cst_59 : f32 to vector<8x256xf32>
    %166 = arith.mulf %165, %164 : vector<8x256xf32>
    %cst_60 = arith.constant 5.000000e-01 : f32
    %167 = vector.broadcast %cst_60 : f32 to vector<8x256xf32>
    %168 = arith.addf %166, %167 : vector<8x256xf32>
    %169 = math.tanh %161 : vector<8x256xf32>
    %170 = arith.select %14, %169, %168 : vector<8x256xi1>, vector<8x256xf32>
    %171 = vector.extract_strided_slice %170 {offsets = [0, 0], sizes = [8, 64], strides = [1, 1]} : vector<8x256xf32> to vector<8x64xf32>
    %172 = vector.extract_strided_slice %170 {offsets = [0, 64], sizes = [8, 64], strides = [1, 1]} : vector<8x256xf32> to vector<8x64xf32>
    %173 = vector.extract_strided_slice %170 {offsets = [0, 128], sizes = [8, 64], strides = [1, 1]} : vector<8x256xf32> to vector<8x64xf32>
    %174 = vector.extract_strided_slice %170 {offsets = [0, 192], sizes = [8, 64], strides = [1, 1]} : vector<8x256xf32> to vector<8x64xf32>
    %175 = arith.mulf %172, %142 : vector<8x64xf32>
    %176 = arith.mulf %171, %173 : vector<8x64xf32>
    %177 = arith.addf %175, %176 : vector<8x64xf32>
    %178 = math.tanh %177 : vector<8x64xf32>
    %179 = arith.mulf %174, %178 : vector<8x64xf32>
    %180 = arith.truncf %179 : vector<8x64xf32> to vector<8x64xbf16>
    %181 = vector.extract_strided_slice %180 {offsets = [0, 0], sizes = [8, 32], strides = [1, 1]} : vector<8x64xbf16> to vector<8x32xbf16>
    %182 = arith.index_cast %c4_i32 : i32 to index
    %c0_61 = arith.constant 0 : index
    %c0_62 = arith.constant 0 : index
    %183 = vector.load %arg8[%182, %c0_61, %c0_62] : memref<8x8x32xbf16, #tpu.memory_space<vmem>>, vector<1x8x32xbf16>
    %184 = vector.shape_cast %183 : vector<1x8x32xbf16> to vector<8x32xbf16>
    %185 = vector.shape_cast %181 : vector<8x32xbf16> to vector<1x8x32xbf16>
    tpu.vector_store %arg8[%182, %c0_61, %c0_62], %185 {strides = array<i32>} : memref<8x8x32xbf16, #tpu.memory_space<vmem>>, vector<1x8x32xbf16>,
    %186 = vector.extract_strided_slice %180 {offsets = [0, 32], sizes = [8, 32], strides = [1, 1]} : vector<8x64xbf16> to vector<8x32xbf16>
    %c7_i32_63 = arith.constant 7 : i32
    %187 = arith.subi %c7_i32_63, %c4_i32 : i32
    %188 = arith.index_cast %187 : i32 to index
    %c0_64 = arith.constant 0 : index
    %c0_65 = arith.constant 0 : index
    %189 = vector.load %arg9[%188, %c0_64, %c0_65] : memref<8x8x32xbf16, #tpu.memory_space<vmem>>, vector<1x8x32xbf16>
    %190 = vector.shape_cast %189 : vector<1x8x32xbf16> to vector<8x32xbf16>
    %191 = vector.shape_cast %186 : vector<8x32xbf16> to vector<1x8x32xbf16>
    tpu.vector_store %arg9[%188, %c0_64, %c0_65], %191 {strides = array<i32>} : memref<8x8x32xbf16, #tpu.memory_space<vmem>>, vector<1x8x32xbf16>,
    %c5_i32 = arith.constant 5 : i32
    %cst_66 = arith.constant dense<0.000000e+00> : vector<8x256xf32>
    %192 = tpu.matmul %180, %8, %cst_66 {dimension_numbers = #tpu.dot_dimension_numbers<[1], [0], [0], [1], [0, 0, 1, 1], [], []>} : vector<8x64xbf16>, vector<64x256xbf16>, vector<8x256xf32> -> vector<8x256xf32>
    %193 = arith.index_cast %c5_i32 : i32 to index
    %c0_67 = arith.constant 0 : index
    %c0_68 = arith.constant 0 : index
    %194 = vector.load %arg7[%193, %c0_67, %c0_68] : memref<8x8x256xf32, #tpu.memory_space<vmem>>, vector<1x8x256xf32>
    %195 = vector.shape_cast %194 : vector<1x8x256xf32> to vector<8x256xf32>
    %196 = arith.addf %192, %195 : vector<8x256xf32>
    %cst_69 = arith.constant 5.000000e-01 : f32
    %197 = vector.broadcast %cst_69 : f32 to vector<8x256xf32>
    %198 = arith.mulf %197, %196 : vector<8x256xf32>
    %199 = math.tanh %198 : vector<8x256xf32>
    %cst_70 = arith.constant 5.000000e-01 : f32
    %200 = vector.broadcast %cst_70 : f32 to vector<8x256xf32>
    %201 = arith.mulf %200, %199 : vector<8x256xf32>
    %cst_71 = arith.constant 5.000000e-01 : f32
    %202 = vector.broadcast %cst_71 : f32 to vector<8x256xf32>
    %203 = arith.addf %201, %202 : vector<8x256xf32>
    %204 = math.tanh %196 : vector<8x256xf32>
    %205 = arith.select %14, %204, %203 : vector<8x256xi1>, vector<8x256xf32>
    %206 = vector.extract_strided_slice %205 {offsets = [0, 0], sizes = [8, 64], strides = [1, 1]} : vector<8x256xf32> to vector<8x64xf32>
    %207 = vector.extract_strided_slice %205 {offsets = [0, 64], sizes = [8, 64], strides = [1, 1]} : vector<8x256xf32> to vector<8x64xf32>
    %208 = vector.extract_strided_slice %205 {offsets = [0, 128], sizes = [8, 64], strides = [1, 1]} : vector<8x256xf32> to vector<8x64xf32>
    %209 = vector.extract_strided_slice %205 {offsets = [0, 192], sizes = [8, 64], strides = [1, 1]} : vector<8x256xf32> to vector<8x64xf32>
    %210 = arith.mulf %207, %177 : vector<8x64xf32>
    %211 = arith.mulf %206, %208 : vector<8x64xf32>
    %212 = arith.addf %210, %211 : vector<8x64xf32>
    %213 = math.tanh %212 : vector<8x64xf32>
    %214 = arith.mulf %209, %213 : vector<8x64xf32>
    %215 = arith.truncf %214 : vector<8x64xf32> to vector<8x64xbf16>
    %216 = vector.extract_strided_slice %215 {offsets = [0, 0], sizes = [8, 32], strides = [1, 1]} : vector<8x64xbf16> to vector<8x32xbf16>
    %217 = arith.index_cast %c5_i32 : i32 to index
    %c0_72 = arith.constant 0 : index
    %c0_73 = arith.constant 0 : index
    %218 = vector.load %arg8[%217, %c0_72, %c0_73] : memref<8x8x32xbf16, #tpu.memory_space<vmem>>, vector<1x8x32xbf16>
    %219 = vector.shape_cast %218 : vector<1x8x32xbf16> to vector<8x32xbf16>
    %220 = vector.shape_cast %216 : vector<8x32xbf16> to vector<1x8x32xbf16>
    tpu.vector_store %arg8[%217, %c0_72, %c0_73], %220 {strides = array<i32>} : memref<8x8x32xbf16, #tpu.memory_space<vmem>>, vector<1x8x32xbf16>,
    %221 = vector.extract_strided_slice %215 {offsets = [0, 32], sizes = [8, 32], strides = [1, 1]} : vector<8x64xbf16> to vector<8x32xbf16>
    %c7_i32_74 = arith.constant 7 : i32
    %222 = arith.subi %c7_i32_74, %c5_i32 : i32
    %223 = arith.index_cast %222 : i32 to index
    %c0_75 = arith.constant 0 : index
    %c0_76 = arith.constant 0 : index
    %224 = vector.load %arg9[%223, %c0_75, %c0_76] : memref<8x8x32xbf16, #tpu.memory_space<vmem>>, vector<1x8x32xbf16>
    %225 = vector.shape_cast %224 : vector<1x8x32xbf16> to vector<8x32xbf16>
    %226 = vector.shape_cast %221 : vector<8x32xbf16> to vector<1x8x32xbf16>
    tpu.vector_store %arg9[%223, %c0_75, %c0_76], %226 {strides = array<i32>} : memref<8x8x32xbf16, #tpu.memory_space<vmem>>, vector<1x8x32xbf16>,
    %c6_i32 = arith.constant 6 : i32
    %cst_77 = arith.constant dense<0.000000e+00> : vector<8x256xf32>
    %227 = tpu.matmul %215, %8, %cst_77 {dimension_numbers = #tpu.dot_dimension_numbers<[1], [0], [0], [1], [0, 0, 1, 1], [], []>} : vector<8x64xbf16>, vector<64x256xbf16>, vector<8x256xf32> -> vector<8x256xf32>
    %228 = arith.index_cast %c6_i32 : i32 to index
    %c0_78 = arith.constant 0 : index
    %c0_79 = arith.constant 0 : index
    %229 = vector.load %arg7[%228, %c0_78, %c0_79] : memref<8x8x256xf32, #tpu.memory_space<vmem>>, vector<1x8x256xf32>
    %230 = vector.shape_cast %229 : vector<1x8x256xf32> to vector<8x256xf32>
    %231 = arith.addf %227, %230 : vector<8x256xf32>
    %cst_80 = arith.constant 5.000000e-01 : f32
    %232 = vector.broadcast %cst_80 : f32 to vector<8x256xf32>
    %233 = arith.mulf %232, %231 : vector<8x256xf32>
    %234 = math.tanh %233 : vector<8x256xf32>
    %cst_81 = arith.constant 5.000000e-01 : f32
    %235 = vector.broadcast %cst_81 : f32 to vector<8x256xf32>
    %236 = arith.mulf %235, %234 : vector<8x256xf32>
    %cst_82 = arith.constant 5.000000e-01 : f32
    %237 = vector.broadcast %cst_82 : f32 to vector<8x256xf32>
    %238 = arith.addf %236, %237 : vector<8x256xf32>
    %239 = math.tanh %231 : vector<8x256xf32>
    %240 = arith.select %14, %239, %238 : vector<8x256xi1>, vector<8x256xf32>
    %241 = vector.extract_strided_slice %240 {offsets = [0, 0], sizes = [8, 64], strides = [1, 1]} : vector<8x256xf32> to vector<8x64xf32>
    %242 = vector.extract_strided_slice %240 {offsets = [0, 64], sizes = [8, 64], strides = [1, 1]} : vector<8x256xf32> to vector<8x64xf32>
    %243 = vector.extract_strided_slice %240 {offsets = [0, 128], sizes = [8, 64], strides = [1, 1]} : vector<8x256xf32> to vector<8x64xf32>
    %244 = vector.extract_strided_slice %240 {offsets = [0, 192], sizes = [8, 64], strides = [1, 1]} : vector<8x256xf32> to vector<8x64xf32>
    %245 = arith.mulf %242, %212 : vector<8x64xf32>
    %246 = arith.mulf %241, %243 : vector<8x64xf32>
    %247 = arith.addf %245, %246 : vector<8x64xf32>
    %248 = math.tanh %247 : vector<8x64xf32>
    %249 = arith.mulf %244, %248 : vector<8x64xf32>
    %250 = arith.truncf %249 : vector<8x64xf32> to vector<8x64xbf16>
    %251 = vector.extract_strided_slice %250 {offsets = [0, 0], sizes = [8, 32], strides = [1, 1]} : vector<8x64xbf16> to vector<8x32xbf16>
    %252 = arith.index_cast %c6_i32 : i32 to index
    %c0_83 = arith.constant 0 : index
    %c0_84 = arith.constant 0 : index
    %253 = vector.load %arg8[%252, %c0_83, %c0_84] : memref<8x8x32xbf16, #tpu.memory_space<vmem>>, vector<1x8x32xbf16>
    %254 = vector.shape_cast %253 : vector<1x8x32xbf16> to vector<8x32xbf16>
    %255 = vector.shape_cast %251 : vector<8x32xbf16> to vector<1x8x32xbf16>
    tpu.vector_store %arg8[%252, %c0_83, %c0_84], %255 {strides = array<i32>} : memref<8x8x32xbf16, #tpu.memory_space<vmem>>, vector<1x8x32xbf16>,
    %256 = vector.extract_strided_slice %250 {offsets = [0, 32], sizes = [8, 32], strides = [1, 1]} : vector<8x64xbf16> to vector<8x32xbf16>
    %c7_i32_85 = arith.constant 7 : i32
    %257 = arith.subi %c7_i32_85, %c6_i32 : i32
    %258 = arith.index_cast %257 : i32 to index
    %c0_86 = arith.constant 0 : index
    %c0_87 = arith.constant 0 : index
    %259 = vector.load %arg9[%258, %c0_86, %c0_87] : memref<8x8x32xbf16, #tpu.memory_space<vmem>>, vector<1x8x32xbf16>
    %260 = vector.shape_cast %259 : vector<1x8x32xbf16> to vector<8x32xbf16>
    %261 = vector.shape_cast %256 : vector<8x32xbf16> to vector<1x8x32xbf16>
    tpu.vector_store %arg9[%258, %c0_86, %c0_87], %261 {strides = array<i32>} : memref<8x8x32xbf16, #tpu.memory_space<vmem>>, vector<1x8x32xbf16>,
    %c7_i32_88 = arith.constant 7 : i32
    %cst_89 = arith.constant dense<0.000000e+00> : vector<8x256xf32>
    %262 = tpu.matmul %250, %8, %cst_89 {dimension_numbers = #tpu.dot_dimension_numbers<[1], [0], [0], [1], [0, 0, 1, 1], [], []>} : vector<8x64xbf16>, vector<64x256xbf16>, vector<8x256xf32> -> vector<8x256xf32>
    %263 = arith.index_cast %c7_i32_88 : i32 to index
    %c0_90 = arith.constant 0 : index
    %c0_91 = arith.constant 0 : index
    %264 = vector.load %arg7[%263, %c0_90, %c0_91] : memref<8x8x256xf32, #tpu.memory_space<vmem>>, vector<1x8x256xf32>
    %265 = vector.shape_cast %264 : vector<1x8x256xf32> to vector<8x256xf32>
    %266 = arith.addf %262, %265 : vector<8x256xf32>
    %cst_92 = arith.constant 5.000000e-01 : f32
    %267 = vector.broadcast %cst_92 : f32 to vector<8x256xf32>
    %268 = arith.mulf %267, %266 : vector<8x256xf32>
    %269 = math.tanh %268 : vector<8x256xf32>
    %cst_93 = arith.constant 5.000000e-01 : f32
    %270 = vector.broadcast %cst_93 : f32 to vector<8x256xf32>
    %271 = arith.mulf %270, %269 : vector<8x256xf32>
    %cst_94 = arith.constant 5.000000e-01 : f32
    %272 = vector.broadcast %cst_94 : f32 to vector<8x256xf32>
    %273 = arith.addf %271, %272 : vector<8x256xf32>
    %274 = math.tanh %266 : vector<8x256xf32>
    %275 = arith.select %14, %274, %273 : vector<8x256xi1>, vector<8x256xf32>
    %276 = vector.extract_strided_slice %275 {offsets = [0, 0], sizes = [8, 64], strides = [1, 1]} : vector<8x256xf32> to vector<8x64xf32>
    %277 = vector.extract_strided_slice %275 {offsets = [0, 64], sizes = [8, 64], strides = [1, 1]} : vector<8x256xf32> to vector<8x64xf32>
    %278 = vector.extract_strided_slice %275 {offsets = [0, 128], sizes = [8, 64], strides = [1, 1]} : vector<8x256xf32> to vector<8x64xf32>
    %279 = vector.extract_strided_slice %275 {offsets = [0, 192], sizes = [8, 64], strides = [1, 1]} : vector<8x256xf32> to vector<8x64xf32>
    %280 = arith.mulf %277, %247 : vector<8x64xf32>
    %281 = arith.mulf %276, %278 : vector<8x64xf32>
    %282 = arith.addf %280, %281 : vector<8x64xf32>
    %283 = math.tanh %282 : vector<8x64xf32>
    %284 = arith.mulf %279, %283 : vector<8x64xf32>
    %285 = arith.truncf %284 : vector<8x64xf32> to vector<8x64xbf16>
    %286 = vector.extract_strided_slice %285 {offsets = [0, 0], sizes = [8, 32], strides = [1, 1]} : vector<8x64xbf16> to vector<8x32xbf16>
    %287 = arith.index_cast %c7_i32_88 : i32 to index
    %c0_95 = arith.constant 0 : index
    %c0_96 = arith.constant 0 : index
    %288 = vector.load %arg8[%287, %c0_95, %c0_96] : memref<8x8x32xbf16, #tpu.memory_space<vmem>>, vector<1x8x32xbf16>
    %289 = vector.shape_cast %288 : vector<1x8x32xbf16> to vector<8x32xbf16>
    %290 = vector.shape_cast %286 : vector<8x32xbf16> to vector<1x8x32xbf16>
    tpu.vector_store %arg8[%287, %c0_95, %c0_96], %290 {strides = array<i32>} : memref<8x8x32xbf16, #tpu.memory_space<vmem>>, vector<1x8x32xbf16>,
    %291 = vector.extract_strided_slice %285 {offsets = [0, 32], sizes = [8, 32], strides = [1, 1]} : vector<8x64xbf16> to vector<8x32xbf16>
    %c7_i32_97 = arith.constant 7 : i32
    %292 = arith.subi %c7_i32_97, %c7_i32_88 : i32
    %293 = arith.index_cast %292 : i32 to index
    %c0_98 = arith.constant 0 : index
    %c0_99 = arith.constant 0 : index
    %294 = vector.load %arg9[%293, %c0_98, %c0_99] : memref<8x8x32xbf16, #tpu.memory_space<vmem>>, vector<1x8x32xbf16>
    %295 = vector.shape_cast %294 : vector<1x8x32xbf16> to vector<8x32xbf16>
    %296 = vector.shape_cast %291 : vector<8x32xbf16> to vector<1x8x32xbf16>
    tpu.vector_store %arg9[%293, %c0_98, %c0_99], %296 {strides = array<i32>} : memref<8x8x32xbf16, #tpu.memory_space<vmem>>, vector<1x8x32xbf16>,
    %c8_i32 = arith.constant 8 : i32
    %c0_100 = arith.constant 0 : index
    %c0_101 = arith.constant 0 : index
    %c0_102 = arith.constant 0 : index
    %297 = vector.load %arg8[%c0_100, %c0_101, %c0_102] : memref<8x8x32xbf16, #tpu.memory_space<vmem>>, vector<8x8x32xbf16>
    %298 = vector.shape_cast %297 : vector<8x8x32xbf16> to vector<64x32xbf16>
    %c0_103 = arith.constant 0 : index
    %c0_104 = arith.constant 0 : index
    %c0_105 = arith.constant 0 : index
    %299 = vector.load %arg9[%c0_103, %c0_104, %c0_105] : memref<8x8x32xbf16, #tpu.memory_space<vmem>>, vector<8x8x32xbf16>
    %300 = vector.shape_cast %299 : vector<8x8x32xbf16> to vector<64x32xbf16>
    %301 = tpu.concatenate %298, %300 in 1 : vector<64x32xbf16>, vector<64x32xbf16> -> vector<64x64xbf16>
    %c0_106 = arith.constant 0 : index
    %c0_107 = arith.constant 0 : index
    %302 = vector.load %arg4[%c0_106, %c0_107] : memref<64x128xbf16, #tpu.memory_space<vmem>>, vector<64x128xbf16>
    %cst_108 = arith.constant dense<0.000000e+00> : vector<64x128xf32>
    %303 = tpu.matmul %301, %302, %cst_108 {dimension_numbers = #tpu.dot_dimension_numbers<[1], [0], [0], [1], [0, 0, 1, 1], [], []>} : vector<64x64xbf16>, vector<64x128xbf16>, vector<64x128xf32> -> vector<64x128xf32>
    %c0_109 = arith.constant 0 : index
    %c0_110 = arith.constant 0 : index
    %304 = vector.load %arg5[%c0_109, %c0_110] : memref<1x128xf32, #tpu.memory_space<vmem>>, vector<1x128xf32>
    %305 = vector.broadcast %304 : vector<1x128xf32> to vector<64x128xf32>
    %306 = arith.addf %303, %305 : vector<64x128xf32>
    %307 = vector.shape_cast %306 : vector<64x128xf32> to vector<8x8x128xf32>
    %c0_111 = arith.constant 0 : index
    %c0_112 = arith.constant 0 : index
    %c0_113 = arith.constant 0 : index
    %308 = vector.load %arg6[%c0_111, %c0_112, %c0_113] : memref<8x8x128xf32, #tpu.memory_space<vmem>>, vector<8x8x128xf32>
    tpu.vector_store %arg6[%c0_111, %c0_112, %c0_113], %307 {strides = array<i32>} : memref<8x8x128xf32, #tpu.memory_space<vmem>>, vector<8x8x128xf32>,
    return
  }
}

</mosaic_0001>

<bundles_post_ra>
// kernel: tpu_custom_call.1
= control target key start
LH: loop header
LB: loop body
LE: loop exit
PB: predicated region body
PF: predicated region fallthrough
CT: control target
= control target key end

     0   :  { %11 = vsyncpa [#allocation6], 0  ;;  %s1671_s0 = inlined_call_operand.vmem [shape: bf16[64,32], index: 0, kind: input, shape index: {}]   ;;  %s1672_s1 = inlined_call_operand.vmem [shape: bf16[32,256], index: 1, kind: input, shape index: {}]   ;;  %s1673_s2 = inlined_call_operand.vmem [shape: f32[1,256], index: 2, kind: input, shape index: {}]   ;;  %s1674_s3 = inlined_call_operand.hbm [shape: bf16[64,256], index: 3, kind: input, shape index: {}]   ;;  %s1675_s4 = inlined_call_operand.hbm [shape: bf16[64,128], index: 4, kind: input, shape index: {}]   ;;  %s1676_s5 = inlined_call_operand.vmem [shape: f32[1,128], index: 5, kind: input, shape index: {}]   ;;  %s1677_s6 = inlined_call_operand.hbm [shape: f32[8,8,128], index: 6, kind: output, shape index: {}]  }
   0x1   :  { %12 = vsyncpa [#allocation9], 0 }
   0x2   :  { %13 = vsyncpa [#allocation7], 0  ;;  %s24_s23 = sshll.u32 %s1674_s3, 4  ;;  %s1307_s24 = smov [#allocation5]   ;;  %s25_s23 = int_to_ptr.hbm [resolvable:$true] %s24_s23 }
   0x3   :  { %s26_s25 = sshll.u32 %s1307_s24, 4  ;;  %s37_s28 = sshll.u32 %s1675_s4, 4  ;;  %s27_s25 = int_to_ptr.vmem [resolvable:$true] %s26_s25  ;;  %s38_s28 = int_to_ptr.hbm [resolvable:$true] %s37_s28 }
   0x4   :  { %s1308_s29 = smov 128   ;;  %s1309_s30 = smov 8  }
   0x5   :  { %32 = dma.hbm_to_vmem [thread:$0]  %s25_s23, 1024, %s27_s25, [#allocation6], %s1308_s29, %s1308_s29, %s1309_s30  }
   0x6   :  { %s1310_s7 = smov [#allocation8]   ;;  %s1311_s9 = smov 64  }
   0x7   :  { %s39_s8 = sshll.u32 %s1310_s7, 4  ;;  %s1312_s3 = smov 4   ;;  %s40_s8 = int_to_ptr.vmem [resolvable:$true] %s39_s8 }
   0x8   :  { %45 = dma.hbm_to_vmem [thread:$0]  %s38_s28, 512, %s40_s8, [#allocation9], %s1311_s9, %s1311_s9, %s1312_s3  }
   0x9   :  { %1301 = dma.done.wait [#allocation6], 1024  }
   0xa   :  { %1302 = vsyncadd [#allocation6], 4294966272 }
   0xb   :  { %1303 = dma.done.wait [#allocation9], 512  }
   0xc   :  { %1304 = vsyncadd [#allocation9], 4294966784  ;;  %v1009_v0 = vld [vmem:[%s1672_s1 + $0x10] sm:$0xf]  ;;  %v1128_v1 = vld [vmem:[%s1672_s1 + $0x14] sm:$0xf0] }
   0xd   :  { %v1001_v2 = vld [vmem:[%s1672_s1] sm:$0xf]  ;;  %v1010_v3 = vor.u32 %v1128_v1, %v1009_v0  ;;  %v1126_v4 = vld [vmem:[%s1672_s1 + $0x4] sm:$0xf0]  ;;  %v1135_v5 = vld [vmem:[#allocation5 + $0x34] sm:$0xf]  ;;  %v210_v0 = vlaneseq }
   0xe   :  { %v1051_v6 = vld [vmem:[#allocation5 + $0x38] sm:$0xf0]  ;;  %v1002_v7 = vor.u32 %v1126_v4, %v1001_v2  ;;  %v1049_v8 = vld [vmem:[#allocation5 + $0x30] sm:$0xf]  ;;  %v1136_v9 = vld [vmem:[#allocation5 + $0x34] sm:$0xf0] }
   0xf   :  { %1149 = vmatpush.bf16.msra.mxu1 %v1010_v3  ;;  %1150 = vmatpush.bf16.msra.mxu2 %v1010_v3  ;;  %v1127_v10 = vld [vmem:[%s1672_s1 + $0x14] sm:$0xf]  ;;  %v1377_v11 = vor.u32 %v1136_v9, %v1049_v8  ;;  %v1011_v12 = vld [vmem:[%s1672_s1 + $0x18] sm:$0xf0]  ;;  %v1385_v13 = vld [vmem:[%s1671_s0 + $0x8] sm:$0xff]  ;;  %v1387_v14 = vor.u32 %v1135_v5, %v1051_v6  ;;  %vm115_vm0 = vcmask 261120  }
  0x10   :  { %1151 = vmatpush.bf16.msra.mxu3 %v1010_v3  ;;  %134 = vmatpush.bf16.msra.mxu0 %v1010_v3  ;;  %v1014_v15 = vor.u32 %v1127_v10, %v1011_v12  ;;  %v1041_v16 = vld [vmem:[#allocation5 + $0x20] sm:$0xf]  ;;  %v1134_v17 = vld [vmem:[#allocation5 + $0x24] sm:$0xf0]  ;;  %v1392_v18 = vld [vmem:[%s1671_s0 + $0x10] sm:$0xff]  ;;  %v1313_v40 = vmov 0  }
  0x11   :  { %v1133_v19 = vld [vmem:[#allocation5 + $0x24] sm:$0xf]  ;;  %v1043_v20 = vld [vmem:[#allocation5 + $0x28] sm:$0xf0]  ;;  %v1397_v21 = vld [vmem:[%s1671_s0 + $0x18] sm:$0xff]  ;;  %v1406_v24 = vor.u32 %v1134_v17, %v1041_v16  ;;  %v211_v3 = vand.u32 127, %v210_v0 }
  0x12   :  { %v1125_v22 = vld [vmem:[%s1672_s1 + $0x4] sm:$0xf]  ;;  %v1003_v23 = vld [vmem:[%s1672_s1 + $0x8] sm:$0xf0]  ;;  %v1409_v25 = vor.u32 %v1133_v19, %v1043_v20  ;;  %v1033_v26 = vld [vmem:[#allocation5 + $0x10] sm:$0xf] }
  0x13   :  { %1152 = vmatpush.bf16.msra.mxu1 %v1002_v7  ;;  %1153 = vmatpush.bf16.msra.mxu2 %v1002_v7  ;;  %v1132_v27 = vld [vmem:[#allocation5 + $0x14] sm:$0xf0]  ;;  %v1006_v28 = vor.u32 %v1125_v22, %v1003_v23  ;;  %v1131_v29 = vld [vmem:[#allocation5 + $0x14] sm:$0xf]  ;;  %v1035_v30 = vld [vmem:[#allocation5 + $0x18] sm:$0xf0] }
  0x14   :  { %1154 = vmatpush.bf16.msra.mxu3 %v1002_v7  ;;  %v1121_v31 = vld [vmem:[%s1671_s0] sm:$0xff]  ;;  %135 = vmatpush.bf16.msra.mxu0 %v1002_v7  ;;  %v1421_v32 = vor.u32 %v1132_v27, %v1033_v26  ;;  %v1425_v33 = vor.u32 %v1131_v29, %v1035_v30  ;;  %v1130_v35 = vld [vmem:[#allocation5 + $0x4] sm:$0xf0]  ;;  %v1027_v37 = vld [vmem:[#allocation5 + $0x8] sm:$0xf0]  ;;  %v1501_v6 = vadd.s32 128, %v211_v3 }
  0x15   :  { %v1025_v34 = vld [vmem:[#allocation5] sm:$0xf]  ;;  %v1129_v36 = vld [vmem:[#allocation5 + $0x4] sm:$0xf]  ;;  %vm261_vm2 = vcmask 523264   ;;  %vm317_vm3 = vcmask 257024  }
  0x16   :  { %1016 = vmatmul.msk.bf16.vlgmr.msra.gmra.mxu1 %vm115_vm0, %v1385_v13  ;;  %1017 = vmatmul.msk.bf16.vlgmr.msra.gmra.mxu2 %vm115_vm0, %v1392_v18  ;;  %v1430_v38 = vor.u32 %v1130_v35, %v1025_v34  ;;  %v1434_v39 = vor.u32 %v1129_v36, %v1027_v37  ;;  %v69_v41 = vld [vmem:[%s1673_s2] sm:$0x3]  ;;  %vm216_vm1 = vcmp.lt.s32.totalorder %v1501_v6, 192  ;;  %s1314_s2 = smov 32   ;;  %s969_s14 = sshll.u32 %s1677_s6, 4  ;;  %s970_s14 = int_to_ptr.hbm [resolvable:$true] %s969_s14 }
  0x17   :  { %269 = vmatpush.bf16.msrb.mxu2 %v1377_v11  ;;  %163 = vmatpush.bf16.msrb.mxu1 %v1014_v15  ;;  %v1477_v42 = vperm.slane %v69_v41, 0  ;;  %v1497_v55 = vperm.slane %v69_v41, 1 }
  0x18   :  { %282 = vmatpush.bf16.msrb.mxu3 %v1387_v14  ;;  %545 = vmatpush.bf16.msrb.mxu0 %v1377_v11 }
  0x19   :  { %1018 = vmatmul.msk.bf16.vlgmr.msra.gmra.mxu3 %vm115_vm0, %v1397_v21  ;;  %1015 = vmatmul.msk.bf16.vlgmr.msra.gmra.mxu0 %vm115_vm0, %v1121_v31 }
  0x1b   :  { %270 = vmatpush.bf16.msrb.mxu2 %v1406_v24  ;;  %164 = vmatpush.bf16.msrb.mxu1 %v1006_v28 }
  0x1c   :  { %283 = vmatpush.bf16.msrb.mxu3 %v1409_v25  ;;  %546 = vmatpush.bf16.msrb.mxu0 %v1406_v24 }
  0x1f   :  { %558 = vmatpush.bf16.msra.mxu1 %v1387_v14  ;;  %271 = vmatpush.bf16.msrb.mxu2 %v1421_v32 }
  0x20   :  { %284 = vmatpush.bf16.msrb.mxu3 %v1425_v33  ;;  %547 = vmatpush.bf16.msrb.mxu0 %v1421_v32 }
  0x23   :  { %559 = vmatpush.bf16.msra.mxu1 %v1409_v25  ;;  %272 = vmatpush.bf16.msrb.mxu2 %v1430_v38 }
  0x24   :  { %285 = vmatpush.bf16.msrb.mxu3 %v1434_v39  ;;  %548 = vmatpush.bf16.msrb.mxu0 %v1430_v38 }
  0x26   :  { %1019 = vmatmul.msk.bf16.vlgmr.msrb.gmra.mxu1 %vm115_vm0, %v1121_v31  ;;  %273 = vmatmul.bf16.vlgmr.msrb.gmra.mxu2 %v1313_v40 }
  0x27   :  { %338 = vmatpush.bf16.msra.mxu2 %v1377_v11  ;;  %560 = vmatpush.bf16.msra.mxu1 %v1425_v33 }
  0x28   :  { %351 = vmatpush.bf16.msra.mxu3 %v1387_v14  ;;  %683 = vmatpush.bf16.msra.mxu0 %v1377_v11 }
  0x29   :  { %286 = vmatmul.bf16.vlgmr.msrb.gmra.mxu3 %v1313_v40 }
  0x2b   :  { %339 = vmatpush.bf16.msra.mxu2 %v1406_v24  ;;  %561 = vmatpush.bf16.msra.mxu1 %v1434_v39 }
  0x2c   :  { %352 = vmatpush.bf16.msra.mxu3 %v1409_v25  ;;  %684 = vmatpush.bf16.msra.mxu0 %v1406_v24 }
  0x2f   :  { %696 = vmatpush.bf16.msrb.mxu1 %v1387_v14  ;;  %340 = vmatpush.bf16.msra.mxu2 %v1421_v32 }
  0x30   :  { %353 = vmatpush.bf16.msra.mxu3 %v1425_v33  ;;  %685 = vmatpush.bf16.msra.mxu0 %v1421_v32 }
  0x33   :  { %697 = vmatpush.bf16.msrb.mxu1 %v1409_v25  ;;  %341 = vmatpush.bf16.msra.mxu2 %v1430_v38 }
  0x34   :  { %354 = vmatpush.bf16.msra.mxu3 %v1434_v39  ;;  %686 = vmatpush.bf16.msra.mxu0 %v1430_v38 }
  0x36   :  { %1020 = vmatmul.msk.bf16.gmra.mxu1 %vm115_vm0, %v1385_v13 }
  0x37   :  { %407 = vmatpush.bf16.msrb.mxu2 %v1377_v11  ;;  %698 = vmatpush.bf16.msrb.mxu1 %v1425_v33 }
  0x38   :  { %420 = vmatpush.bf16.msrb.mxu3 %v1387_v14 }
  0x3b   :  { %408 = vmatpush.bf16.msrb.mxu2 %v1406_v24  ;;  %699 = vmatpush.bf16.msrb.mxu1 %v1434_v39 }
  0x3c   :  { %421 = vmatpush.bf16.msrb.mxu3 %v1409_v25 }
  0x3f   :  { %409 = vmatpush.bf16.msrb.mxu2 %v1421_v32 }
  0x40   :  { %422 = vmatpush.bf16.msrb.mxu3 %v1425_v33 }
  0x43   :  { %410 = vmatpush.bf16.msrb.mxu2 %v1430_v38 }
  0x44   :  { %423 = vmatpush.bf16.msrb.mxu3 %v1434_v39 }
  0x46   :  { %1021 = vmatmul.msk.bf16.gmra.mxu1 %vm115_vm0, %v1392_v18 }
  0x56   :  { %1022 = vmatmul.msk.bf16.gmra.mxu1 %vm115_vm0, %v1397_v21 }
  0x93   :  { %v142_v43 = vpop.f32.mrf.mxu1 }
  0x94   :  { %v1480_v44 = vadd.f32 %v142_v43, %v1477_v42 }
  0x96   :  { %v137_v56 = vpop.f32.mrf.mxu0 }
  0x97   :  { %v138_v57 = vadd.f32 %v137_v56, %v1477_v42 }
  0x99   :  { %v147_v45 = vpop.f32.mrf.mxu2 }
  0x9a   :  { %v1483_v46 = vadd.f32 %v147_v45, %v1477_v42 }
  0x9b   :  { %v144_v49 = vpop.f32.mrf.mxu1 }
  0x9c   :  { %v152_v47 = vpop.f32.mrf.mxu3  ;;  %v1489_v50 = vadd.f32 %v144_v49, %v1477_v42 }
  0x9d   :  { %v1486_v48 = vadd.f32 %v152_v47, %v1477_v42 }
  0x9e   :  { %v139_v29 = vpop.f32.mrf.mxu0 }
  0x9f   :  { %v140_v31 = vadd.f32 %v139_v29, %v1477_v42 }
  0xa1   :  { %v149_v51 = vpop.f32.mrf.mxu2 }
  0xa2   :  { %v1492_v52 = vadd.f32 %v149_v51, %v1477_v42 }
  0xa3   :  { %v166_v58 = vpop.f32.mrf.mxu1 }
  0xa4   :  { %v154_v53 = vpop.f32.mrf.mxu3  ;;  %v167_v59 = vadd.f32 %v166_v58, %v1497_v55 }
  0xa5   :  { %v1495_v54 = vadd.f32 %v154_v53, %v1477_v42 }
  0xa9   :  { %v274_v60 = vpop.f32.mrf.mxu2 }
  0xaa   :  { %v275_v61 = vadd.f32 %v274_v60, %v138_v57 }
  0xab   :  { %v168_v30 = vpop.f32.mrf.mxu1 }
  0xac   :  { %v287_v62 = vpop.f32.mrf.mxu3  ;;  %v291_v1 = vmul.f32 0.5, %v275_v61  ;;  %v169_v34 = vadd.f32 %v168_v30, %v1497_v55 }
  0xad   :  { %v288_v63 = vadd.f32 %v287_v62, %v167_v59 }
  0xae   :  { %1165 = vtanh.f32 %v291_v1 }
  0xaf   :  { %v292_v2 = vmul.f32 0.5, %v288_v63 }
  0xb1   :  { %1167 = vtanh.f32 %v292_v2  ;;  %v276_v4 = vpop.f32.mrf.mxu2 }
  0xb2   :  { %1169 = vtanh.f32 %v288_v63 }
  0xb4   :  { %v289_v5 = vpop.f32.mrf.mxu3  ;;  %v1166_v7 = vpop.eup %1165 }
  0xb5   :  { %v295_v9 = vmul.f32 0.5, %v1166_v7  ;;  %v171_v7 = vpop.f32.mrf.mxu1 }
  0xb7   :  { %v1168_v8 = vpop.eup %1167  ;;  %v297_v12 = vadd.f32 0.5, %v295_v9 }
  0xb8   :  { %v296_v10 = vmul.f32 0.5, %v1168_v8  ;;  %v1170_v15 = vpop.eup %1169  ;;  %v172_v8 = vadd.f32 %v171_v7, %v1497_v55 }
  0xb9   :  { %v303_v18 = vmul.f32 0.0, %v297_v12 }
  0xba   :  { %v298_v13 = vadd.f32 0.5, %v296_v10 }
  0xbc   :  { %v302_v16 = vsel %vm216_vm1, %v1170_v15, %v298_v13 }
  0xbd   :  { %v304_v17 = vmul.f32 %v302_v16, %v297_v12 }
  0xbf   :  { %306 = vrot.lane.b32.xlu0 %v304_v17, %s1311_s9 }
 0x131   :  { %v307_v19 = vpop.permute.xlu0 %306 }
 0x132   :  { %v309_v20 = vadd.f32 %v307_v19, %v303_v18 }
 0x134   :  { %1171 = vtanh.f32 %v309_v20 }
 0x13a   :  { %v1172_v21 = vpop.eup %1171 }
 0x13b   :  { %v311_v22 = vmul.f32 %v1172_v21, %v302_v16 }
 0x13d   :  { %v1507_v23 = vpack.c.bf16 %v311_v22, %v311_v22 }
 0x13f   :  { %v327_v26 = vunpack.c.l.b16 %v1507_v23 }
 0x141   :  { %v328_v27 = vpack.c.b16 %v327_v26, %v327_v26 }
 0x143   :  { %329 = vrot.lane.b32.xlu0 %v328_v27, %s1311_s9 }
 0x1b5   :  { %v330_v28 = vpop.permute.xlu0 %329 }
 0x1b6   :  { %1055 = vmatmul.msk.bf16.vlgmr.msra.gmra.mxu2 %vm261_vm2, %v330_v28  ;;  %1056 = vmatmul.msk.bf16.vlgmr.msra.gmra.mxu3 %vm261_vm2, %v330_v28 }
 0x1b7   :  { %489 = vmatpush.bf16.msra.mxu3 %v1387_v14  ;;  %476 = vmatpush.bf16.msra.mxu2 %v1377_v11 }
 0x1bb   :  { %490 = vmatpush.bf16.msra.mxu3 %v1409_v25  ;;  %477 = vmatpush.bf16.msra.mxu2 %v1406_v24 }
 0x1bf   :  { %491 = vmatpush.bf16.msra.mxu3 %v1425_v33  ;;  %478 = vmatpush.bf16.msra.mxu2 %v1421_v32 }
 0x1c3   :  { %492 = vmatpush.bf16.msra.mxu3 %v1434_v39  ;;  %479 = vmatpush.bf16.msra.mxu2 %v1430_v38 }
 0x239   :  { %v343_v35 = vpop.f32.mrf.mxu2  ;;  %v356_v36 = vpop.f32.mrf.mxu3 }
 0x23a   :  { %v344_v37 = vadd.f32 %v343_v35, %v140_v31  ;;  %v357_v40 = vadd.f32 %v356_v36, %v169_v34 }
 0x23c   :  { %v360_v41 = vmul.f32 0.5, %v344_v37  ;;  %v361_v43 = vmul.f32 0.5, %v357_v40 }
 0x23e   :  { %1173 = vtanh.f32 %v360_v41 }
 0x23f   :  { %1175 = vtanh.f32 %v361_v43 }
 0x240   :  { %1177 = vtanh.f32 %v357_v40 }
 0x241   :  { %v345_v45 = vpop.f32.mrf.mxu2  ;;  %v358_v47 = vpop.f32.mrf.mxu3 }
 0x242   :  { %v173_v45 = vpop.f32.mrf.mxu1 }
 0x243   :  { %v174_v47 = vadd.f32 %v173_v45, %v1497_v55 }
 0x244   :  { %v1174_v49 = vpop.eup %1173 }
 0x245   :  { %v1176_v51 = vpop.eup %1175  ;;  %v364_v53 = vmul.f32 0.5, %v1174_v49 }
 0x246   :  { %v365_v56 = vmul.f32 0.5, %v1176_v51  ;;  %v1178_v42 = vpop.eup %1177 }
 0x247   :  { %v366_v57 = vadd.f32 0.5, %v364_v53 }
 0x248   :  { %v367_v58 = vadd.f32 0.5, %v365_v56 }
 0x249   :  { %v372_v61 = vmul.f32 %v366_v57, %v309_v20 }
 0x24a   :  { %v371_v59 = vsel %vm216_vm1, %v1178_v42, %v367_v58  ;;  %v176_v7 = vpop.f32.mrf.mxu1 }
 0x24b   :  { %v373_v60 = vmul.f32 %v371_v59, %v366_v57 }
 0x24d   :  { %375 = vrot.lane.b32.xlu1 %v373_v60, %s1311_s9 }
 0x2bf   :  { %v376_v62 = vpop.permute.xlu1 %375 }
 0x2c0   :  { %v378_v63 = vadd.f32 %v376_v62, %v372_v61 }
 0x2c2   :  { %1179 = vtanh.f32 %v378_v63 }
 0x2c8   :  { %v1180_v0 = vpop.eup %1179 }
 0x2c9   :  { %v380_v1 = vmul.f32 %v1180_v0, %v371_v59 }
 0x2cb   :  { %v1526_v2 = vpack.c.bf16 %v380_v1, %v380_v1 }
 0x2cd   :  { %v396_v3 = vunpack.c.l.b16 %v1526_v2 }
 0x2cf   :  { %v397_v4 = vpack.c.b16 %v396_v3, %v396_v3 }
 0x2d1   :  { %398 = vrot.lane.b32.xlu1 %v397_v4, %s1311_s9 }
 0x343   :  { %v399_v5 = vpop.permute.xlu1 %398 }
 0x344   :  { %1057 = vmatmul.msk.bf16.vlgmr.msrb.gmra.mxu2 %vm261_vm2, %v399_v5  ;;  %1058 = vmatmul.msk.bf16.vlgmr.msrb.gmra.mxu3 %vm261_vm2, %v399_v5 }
 0x345   :  { %627 = vmatpush.bf16.msrb.mxu3 %v1387_v14  ;;  %614 = vmatpush.bf16.msrb.mxu2 %v1377_v11 }
 0x349   :  { %628 = vmatpush.bf16.msrb.mxu3 %v1409_v25  ;;  %615 = vmatpush.bf16.msrb.mxu2 %v1406_v24 }
 0x34d   :  { %629 = vmatpush.bf16.msrb.mxu3 %v1425_v33  ;;  %616 = vmatpush.bf16.msrb.mxu2 %v1421_v32 }
 0x351   :  { %630 = vmatpush.bf16.msrb.mxu3 %v1434_v39  ;;  %617 = vmatpush.bf16.msrb.mxu2 %v1430_v38 }
 0x3c7   :  { %v412_v9 = vpop.f32.mrf.mxu2  ;;  %v425_v10 = vpop.f32.mrf.mxu3 }
 0x3c8   :  { %v413_v12 = vadd.f32 %v412_v9, %v1480_v44  ;;  %v426_v13 = vadd.f32 %v425_v10, %v172_v8  ;;  %v178_v8 = vpop.f32.mrf.mxu1 }
 0x3ca   :  { %v429_v15 = vmul.f32 0.5, %v413_v12  ;;  %v430_v16 = vmul.f32 0.5, %v426_v13  ;;  %v177_v12 = vadd.f32 %v176_v7, %v1497_v55 }
 0x3cc   :  { %1181 = vtanh.f32 %v429_v15 }
 0x3cd   :  { %1183 = vtanh.f32 %v430_v16 }
 0x3ce   :  { %1185 = vtanh.f32 %v426_v13 }
 0x3cf   :  { %v414_v17 = vpop.f32.mrf.mxu2  ;;  %v427_v18 = vpop.f32.mrf.mxu3 }
 0x3d0   :  { %v1570_v9 = vpop.f32.mrf.mxu1 }
 0x3d2   :  { %v1182_v19 = vpop.eup %1181 }
 0x3d3   :  { %v1184_v20 = vpop.eup %1183  ;;  %v433_v21 = vmul.f32 0.5, %v1182_v19 }
 0x3d4   :  { %v434_v22 = vmul.f32 0.5, %v1184_v20  ;;  %v1186_v28 = vpop.eup %1185 }
 0x3d5   :  { %v435_v26 = vadd.f32 0.5, %v433_v21 }
 0x3d6   :  { %v436_v27 = vadd.f32 0.5, %v434_v22 }
 0x3d7   :  { %v441_v44 = vmul.f32 %v435_v26, %v378_v63 }
 0x3d8   :  { %v440_v29 = vsel %vm216_vm1, %v1186_v28, %v436_v27  ;;  %v1572_v10 = vpop.f32.mrf.mxu1 }
 0x3d9   :  { %v442_v30 = vmul.f32 %v440_v29, %v435_v26 }
 0x3db   :  { %444 = vrot.lane.b32.xlu2 %v442_v30, %s1311_s9 }
 0x435   :  { %v445_v31 = vpop.permute.xlu2 %444 }
 0x436   :  { %v447_v34 = vadd.f32 %v445_v31, %v441_v44 }
 0x438   :  { %1187 = vtanh.f32 %v447_v34 }
 0x43e   :  { %v1188_v35 = vpop.eup %1187 }
 0x43f   :  { %v449_v36 = vmul.f32 %v1188_v35, %v440_v29 }
 0x441   :  { %v1545_v37 = vpack.c.bf16 %v449_v36, %v449_v36 }
 0x443   :  { %v465_v40 = vunpack.c.l.b16 %v1545_v37 }
 0x445   :  { %v466_v41 = vpack.c.b16 %v465_v40, %v465_v40 }
 0x447   :  { %467 = vrot.lane.b32.xlu2 %v466_v41, %s1311_s9 }
 0x4a1   :  { %v468_v43 = vpop.permute.xlu2 %467 }
 0x4a2   :  { %1059 = vmatmul.msk.bf16.vlgmr.msra.gmra.mxu2 %vm261_vm2, %v468_v43  ;;  %1060 = vmatmul.msk.bf16.vlgmr.msra.gmra.mxu3 %vm261_vm2, %v468_v43 }
 0x4a3   :  { %765 = vmatpush.bf16.msra.mxu3 %v1387_v14  ;;  %752 = vmatpush.bf16.msra.mxu2 %v1377_v11 }
 0x4a7   :  { %766 = vmatpush.bf16.msra.mxu3 %v1409_v25  ;;  %753 = vmatpush.bf16.msra.mxu2 %v1406_v24 }
 0x4ab   :  { %767 = vmatpush.bf16.msra.mxu3 %v1425_v33  ;;  %754 = vmatpush.bf16.msra.mxu2 %v1421_v32 }
 0x4af   :  { %768 = vmatpush.bf16.msra.mxu3 %v1434_v39  ;;  %755 = vmatpush.bf16.msra.mxu2 %v1430_v38 }
 0x525   :  { %v481_v49 = vpop.f32.mrf.mxu2  ;;  %v494_v51 = vpop.f32.mrf.mxu3 }
 0x526   :  { %v482_v14 = vadd.f32 %v481_v49, %v1489_v50  ;;  %v495_v11 = vadd.f32 %v494_v51, %v174_v47  ;;  %v179_v51 = vadd.f32 %v178_v8, %v1497_v55 }
 0x528   :  { %v498_v53 = vmul.f32 0.5, %v482_v14  ;;  %v499_v25 = vmul.f32 0.5, %v495_v11 }
 0x52a   :  { %1189 = vtanh.f32 %v498_v53 }
 0x52b   :  { %1191 = vtanh.f32 %v499_v25 }
 0x52c   :  { %1193 = vtanh.f32 %v495_v11 }
 0x52d   :  { %v483_v24 = vpop.f32.mrf.mxu2  ;;  %v496_v33 = vpop.f32.mrf.mxu3 }
 0x530   :  { %v1190_v32 = vpop.eup %1189 }
 0x531   :  { %v1192_v56 = vpop.eup %1191  ;;  %v502_v39 = vmul.f32 0.5, %v1190_v32 }
 0x532   :  { %v503_v57 = vmul.f32 0.5, %v1192_v56  ;;  %v1194_v42 = vpop.eup %1193 }
 0x533   :  { %v504_v38 = vadd.f32 0.5, %v502_v39 }
 0x534   :  { %v505_v58 = vadd.f32 0.5, %v503_v57 }
 0x535   :  { %v510_v50 = vmul.f32 %v504_v38, %v447_v34 }
 0x536   :  { %v509_v59 = vsel %vm216_vm1, %v1194_v42, %v505_v58 }
 0x537   :  { %v511_v60 = vmul.f32 %v509_v59, %v504_v38 }
 0x539   :  { %513 = vrot.lane.b32.xlu0 %v511_v60, %s1311_s9 }
 0x5ab   :  { %v514_v61 = vpop.permute.xlu0 %513 }
 0x5ac   :  { %v516_v62 = vadd.f32 %v514_v61, %v510_v50 }
 0x5ae   :  { %1195 = vtanh.f32 %v516_v62 }
 0x5b4   :  { %v1196_v63 = vpop.eup %1195 }
 0x5b5   :  { %v518_v0 = vmul.f32 %v1196_v63, %v509_v59 }
 0x5b7   :  { %v1564_v1 = vpack.c.bf16 %v518_v0, %v518_v0 }
 0x5b9   :  { %v534_v3 = vunpack.c.l.b16 %v1564_v1 }
 0x5bb   :  { %v535_v4 = vpack.c.b16 %v534_v3, %v534_v3 }
 0x5bd   :  { %536 = vrot.lane.b32.xlu1 %v535_v4, %s1311_s9 }
 0x62f   :  { %v537_v5 = vpop.permute.xlu1 %536 }
 0x630   :  { %1061 = vmatmul.msk.bf16.vlgmr.msrb.gmra.mxu0 %vm261_vm2, %v537_v5  ;;  %1062 = vmatmul.msk.bf16.vlgmr.msra.gmra.mxu1 %vm261_vm2, %v537_v5 }
 0x6ad   :  { %v550_v13 = vpop.f32.mrf.mxu0  ;;  %v563_v15 = vpop.f32.mrf.mxu1 }
 0x6ae   :  { %v551_v16 = vadd.f32 %v550_v13, %v1483_v46  ;;  %v564_v17 = vadd.f32 %v563_v15, %v177_v12  ;;  %v182_v12 = vadd.f32 %v1570_v9, %v1497_v55 }
 0x6b0   :  { %v567_v18 = vmul.f32 0.5, %v551_v16  ;;  %v568_v19 = vmul.f32 0.5, %v564_v17 }
 0x6b2   :  { %1197 = vtanh.f32 %v567_v18 }
 0x6b3   :  { %1199 = vtanh.f32 %v568_v19 }
 0x6b4   :  { %1201 = vtanh.f32 %v564_v17 }
 0x6b5   :  { %v552_v20 = vpop.f32.mrf.mxu0  ;;  %v565_v21 = vpop.f32.mrf.mxu1 }
 0x6b8   :  { %v1198_v22 = vpop.eup %1197 }
 0x6b9   :  { %v1200_v26 = vpop.eup %1199  ;;  %v571_v27 = vmul.f32 0.5, %v1198_v22 }
 0x6ba   :  { %v572_v28 = vmul.f32 0.5, %v1200_v26  ;;  %v1202_v44 = vpop.eup %1201 }
 0x6bb   :  { %v573_v29 = vadd.f32 0.5, %v571_v27 }
 0x6bc   :  { %v574_v30 = vadd.f32 0.5, %v572_v28 }
 0x6bd   :  { %v579_v46 = vmul.f32 %v573_v29, %v516_v62 }
 0x6be   :  { %v578_v31 = vsel %vm216_vm1, %v1202_v44, %v574_v30 }
 0x6bf   :  { %v580_v34 = vmul.f32 %v578_v31, %v573_v29 }
 0x6c1   :  { %582 = vrot.lane.b32.xlu2 %v580_v34, %s1311_s9 }
 0x71b   :  { %v583_v35 = vpop.permute.xlu2 %582 }
 0x71c   :  { %v585_v36 = vadd.f32 %v583_v35, %v579_v46 }
 0x71e   :  { %1203 = vtanh.f32 %v585_v36 }
 0x724   :  { %v1204_v40 = vpop.eup %1203 }
 0x725   :  { %v587_v41 = vmul.f32 %v1204_v40, %v578_v31 }
 0x727   :  { %v1579_v43 = vpack.c.bf16 %v587_v41, %v587_v41 }
 0x729   :  { %v603_v45 = vunpack.c.l.b16 %v1579_v43 }
 0x72b   :  { %v604_v47 = vpack.c.b16 %v603_v45, %v603_v45 }
 0x72d   :  { %605 = vrot.lane.b32.xlu0 %v604_v47, %s1311_s9 }
 0x79f   :  { %v606_v49 = vpop.permute.xlu0 %605 }
 0x7a0   :  { %1063 = vmatmul.msk.bf16.vlgmr.msrb.gmra.mxu2 %vm261_vm2, %v606_v49  ;;  %1064 = vmatmul.msk.bf16.vlgmr.msrb.gmra.mxu3 %vm261_vm2, %v606_v49 }
 0x823   :  { %v619_v14 = vpop.f32.mrf.mxu2  ;;  %v632_v11 = vpop.f32.mrf.mxu3 }
 0x824   :  { %v620_v53 = vadd.f32 %v619_v14, %v1492_v52  ;;  %v633_v25 = vadd.f32 %v632_v11, %v179_v51 }
 0x826   :  { %v636_v24 = vmul.f32 0.5, %v620_v53  ;;  %v637_v33 = vmul.f32 0.5, %v633_v25 }
 0x828   :  { %1205 = vtanh.f32 %v636_v24  ;;  %v184_v24 = vadd.f32 %v1572_v10, %v1497_v55 }
 0x829   :  { %1207 = vtanh.f32 %v637_v33 }
 0x82a   :  { %1209 = vtanh.f32 %v633_v25 }
 0x82b   :  { %v621_v32 = vpop.f32.mrf.mxu2  ;;  %v634_v56 = vpop.f32.mrf.mxu3 }
 0x82e   :  { %v1206_v39 = vpop.eup %1205 }
 0x82f   :  { %v1208_v57 = vpop.eup %1207  ;;  %v640_v38 = vmul.f32 0.5, %v1206_v39 }
 0x830   :  { %v641_v58 = vmul.f32 0.5, %v1208_v57  ;;  %v1210_v60 = vpop.eup %1209 }
 0x831   :  { %v642_v42 = vadd.f32 0.5, %v640_v38 }
 0x832   :  { %v643_v59 = vadd.f32 0.5, %v641_v58 }
 0x833   :  { %v648_v52 = vmul.f32 %v642_v42, %v585_v36 }
 0x834   :  { %v647_v50 = vsel %vm216_vm1, %v1210_v60, %v643_v59 }
 0x835   :  { %v649_v61 = vmul.f32 %v647_v50, %v642_v42 }
 0x837   :  { %651 = vrot.lane.b32.xlu1 %v649_v61, %s1311_s9 }
 0x8a9   :  { %v652_v62 = vpop.permute.xlu1 %651 }
 0x8aa   :  { %v654_v63 = vadd.f32 %v652_v62, %v648_v52 }
 0x8ac   :  { %1211 = vtanh.f32 %v654_v63 }
 0x8b2   :  { %v1212_v0 = vpop.eup %1211 }
 0x8b3   :  { %v656_v3 = vmul.f32 %v1212_v0, %v647_v50 }
 0x8b5   :  { %v657_v4 = vpack.c.bf16 %v656_v3, %v656_v3 }
 0x8b7   :  { %v672_v5 = vunpack.c.l.b16 %v657_v4 }
 0x8b9   :  { %v673_v7 = vpack.c.b16 %v672_v5, %v672_v5 }
 0x8bb   :  { %674 = vrot.lane.b32.xlu2 %v673_v7, %s1311_s9 }
 0x915   :  { %v675_v8 = vpop.permute.xlu2 %674 }
 0x916   :  { %1065 = vmatmul.msk.bf16.vlgmr.msra.gmra.mxu0 %vm261_vm2, %v675_v8  ;;  %1066 = vmatmul.msk.bf16.vlgmr.msrb.gmra.mxu1 %vm261_vm2, %v675_v8 }
 0x993   :  { %v688_v13 = vpop.f32.mrf.mxu0  ;;  %v701_v15 = vpop.f32.mrf.mxu1 }
 0x994   :  { %v689_v16 = vadd.f32 %v688_v13, %v1486_v48  ;;  %v702_v17 = vadd.f32 %v701_v15, %v182_v12 }
 0x996   :  { %v705_v18 = vmul.f32 0.5, %v689_v16  ;;  %v706_v19 = vmul.f32 0.5, %v702_v17  ;;  %v1147_v16 = vld [vmem:[#allocation8 + $0x10] sm:$0xff] }
 0x998   :  { %1213 = vtanh.f32 %v705_v18  ;;  %v1146_v18 = vld [vmem:[#allocation8 + $0x8] sm:$0xff] }
 0x999   :  { %1215 = vtanh.f32 %v706_v19  ;;  %v1145_v19 = vld [vmem:[#allocation8] sm:$0xff] }
 0x99a   :  { %1217 = vtanh.f32 %v702_v17 }
 0x99b   :  { %v690_v20 = vpop.f32.mrf.mxu0  ;;  %v703_v21 = vpop.f32.mrf.mxu1 }
 0x99e   :  { %v1214_v22 = vpop.eup %1213 }
 0x99f   :  { %v1216_v26 = vpop.eup %1215  ;;  %v709_v27 = vmul.f32 0.5, %v1214_v22 }
 0x9a0   :  { %v710_v28 = vmul.f32 0.5, %v1216_v26  ;;  %v1218_v44 = vpop.eup %1217 }
 0x9a1   :  { %v711_v29 = vadd.f32 0.5, %v709_v27 }
 0x9a2   :  { %v712_v30 = vadd.f32 0.5, %v710_v28 }
 0x9a3   :  { %v717_v48 = vmul.f32 %v711_v29, %v654_v63 }
 0x9a4   :  { %v716_v9 = vsel %vm216_vm1, %v1218_v44, %v712_v30 }
 0x9a5   :  { %v718_v31 = vmul.f32 %v716_v9, %v711_v29 }
 0x9a7   :  { %720 = vrot.lane.b32.xlu0 %v718_v31, %s1311_s9 }
 0xa19   :  { %v721_v34 = vpop.permute.xlu0 %720 }
 0xa1a   :  { %v723_v46 = vadd.f32 %v721_v34, %v717_v48 }
 0xa1c   :  { %1219 = vtanh.f32 %v723_v46 }
 0xa22   :  { %v1220_v35 = vpop.eup %1219 }
 0xa23   :  { %v725_v36 = vmul.f32 %v1220_v35, %v716_v9 }
 0xa25   :  { %v726_v40 = vpack.c.bf16 %v725_v36, %v725_v36 }
 0xa27   :  { %733 = vrot.lane.b32.xlu0 %v726_v40, %s1314_s2  ;;  %v741_v41 = vunpack.c.l.b16 %v726_v40 }
 0xa29   :  { %v742_v45 = vpack.c.b16 %v741_v41, %v741_v41 }
 0xa2b   :  { %743 = vrot.lane.b32.xlu1 %v742_v45, %s1311_s9 }
 0xa2f   :  { %664 = vrot.lane.b32.xlu0 %v657_v4, %s1314_s2 }
 0xa37   :  { %314 = vrot.lane.b32.xlu0 %v1507_v23, %s1311_s9 }
 0xa3f   :  { %388 = vrot.lane.b32.xlu0 %v1526_v2, %s1314_s2 }
 0xa47   :  { %521 = vrot.lane.b32.xlu0 %v1564_v1, %s1311_s9 }
 0xa4f   :  { %659 = vrot.lane.b32.xlu0 %v657_v4, %s1311_s9 }
 0xa99   :  { %v734_v47 = vpop.permute.xlu0 %733 }
 0xa9a   :  { %737 = vst.msk [vmem:[#allocation4 + $0x4] sm:$0xf] %vm317_vm3, %v734_v47 }
 0xa9d   :  { %v744_v49 = vpop.permute.xlu1 %743 }
 0xa9e   :  { %1067 = vmatmul.msk.bf16.vlgmr.msra.gmra.mxu2 %vm261_vm2, %v744_v49  ;;  %1068 = vmatmul.msk.bf16.vlgmr.msra.gmra.mxu3 %vm261_vm2, %v744_v49 }
 0xaa1   :  { %v665_v51 = vpop.permute.xlu0 %664 }
 0xaa2   :  { %668 = vst.msk [vmem:[#allocation4 + $0x8] sm:$0xf] %vm317_vm3, %v665_v51 }
 0xaa9   :  { %v315_v14 = vpop.permute.xlu0 %314 }
 0xaaa   :  { %318 = vst.msk [vmem:[#allocation3] sm:$0xf] %vm317_vm3, %v315_v14 }
 0xab1   :  { %v389_v11 = vpop.permute.xlu0 %388 }
 0xab2   :  { %392 = vst.msk [vmem:[#allocation4 + $0x18] sm:$0xf] %vm317_vm3, %v389_v11 }
 0xab9   :  { %v522_v53 = vpop.permute.xlu0 %521 }
 0xaba   :  { %525 = vst.msk [vmem:[#allocation3 + $0xc] sm:$0xf] %vm317_vm3, %v522_v53 }
 0xac1   :  { %v660_v25 = vpop.permute.xlu0 %659 }
 0xac2   :  { %663 = vst.msk [vmem:[#allocation3 + $0x14] sm:$0xf] %vm317_vm3, %v660_v25 }
 0xb21   :  { %v757_v33 = vpop.f32.mrf.mxu2  ;;  %v770_v32 = vpop.f32.mrf.mxu3 }
 0xb22   :  { %v758_v56 = vadd.f32 %v757_v33, %v1495_v54  ;;  %v771_v39 = vadd.f32 %v770_v32, %v184_v24 }
 0xb24   :  { %v774_v57 = vmul.f32 0.5, %v758_v56  ;;  %v775_v38 = vmul.f32 0.5, %v771_v39 }
 0xb26   :  { %1221 = vtanh.f32 %v774_v57 }
 0xb27   :  { %1223 = vtanh.f32 %v775_v38 }
 0xb28   :  { %1225 = vtanh.f32 %v771_v39 }
 0xb29   :  { %v759_v58 = vpop.f32.mrf.mxu2  ;;  %v772_v42 = vpop.f32.mrf.mxu3 }
 0xb2c   :  { %v1222_v59 = vpop.eup %1221 }
 0xb2d   :  { %v1224_v60 = vpop.eup %1223  ;;  %v778_v50 = vmul.f32 0.5, %v1222_v59 }
 0xb2e   :  { %v779_v61 = vmul.f32 0.5, %v1224_v60  ;;  %v1226_v63 = vpop.eup %1225 }
 0xb2f   :  { %v780_v52 = vadd.f32 0.5, %v778_v50 }
 0xb30   :  { %v781_v62 = vadd.f32 0.5, %v779_v61 }
 0xb31   :  { %v786_v54 = vmul.f32 %v780_v52, %v723_v46 }
 0xb32   :  { %v785_v55 = vsel %vm216_vm1, %v1226_v63, %v781_v62 }
 0xb33   :  { %v787_v10 = vmul.f32 %v785_v55, %v780_v52 }
 0xb35   :  { %789 = vrot.lane.b32.xlu2 %v787_v10, %s1311_s9 }
 0xb3d   :  { %595 = vrot.lane.b32.xlu2 %v1579_v43, %s1314_s2 }
 0xb45   :  { %526 = vrot.lane.b32.xlu2 %v1564_v1, %s1314_s2 }
 0xb4d   :  { %319 = vrot.lane.b32.xlu2 %v1507_v23, %s1314_s2 }
 0xb55   :  { %452 = vrot.lane.b32.xlu2 %v1545_v37, %s1311_s9 }
 0xb5d   :  { %590 = vrot.lane.b32.xlu2 %v1579_v43, %s1311_s9 }
 0xb65   :  { %728 = vrot.lane.b32.xlu2 %v726_v40, %s1311_s9  ;;  %v1164_v40 = vld [vmem:[%s1676_s5] ss:$0 sm:$0xff]  ;;  %s1315_s5 = smov [#allocation10]  }
 0xb66   :  { %s967_s11 = sshll.u32 %s1315_s5, 4  ;;  %s968_s11 = int_to_ptr.vmem [resolvable:$true] %s967_s11 }
 0xb8f   :  { %v790_v6 = vpop.permute.xlu2 %789 }
 0xb90   :  { %v792_v0 = vadd.f32 %v790_v6, %v786_v54 }
 0xb92   :  { %1227 = vtanh.f32 %v792_v0 }
 0xb97   :  { %v596_v3 = vpop.permute.xlu2 %595 }
 0xb98   :  { %v1228_v4 = vpop.eup %1227  ;;  %599 = vst.msk [vmem:[#allocation4 + $0xc] sm:$0xf] %vm317_vm3, %v596_v3 }
 0xb99   :  { %v794_v1 = vmul.f32 %v1228_v4, %v785_v55 }
 0xb9b   :  { %v795_v5 = vpack.c.bf16 %v794_v1, %v794_v1 }
 0xb9d   :  { %797 = vrot.lane.b32.xlu0 %v795_v5, %s1311_s9  ;;  %802 = vrot.lane.b32.xlu1 %v795_v5, %s1314_s2 }
 0xb9f   :  { %v527_v23 = vpop.permute.xlu2 %526  ;;  %v1142_v21 = vld [vmem:[#allocation4 + $0x8] sm:$0xff] }
 0xba0   :  { %530 = vst.msk [vmem:[#allocation4 + $0x10] sm:$0xf] %vm317_vm3, %v527_v23 }
 0xba5   :  { %457 = vrot.lane.b32.xlu1 %v1545_v37, %s1314_s2  ;;  %v1148_v37 = vld [vmem:[#allocation8 + $0x18] sm:$0xff] }
 0xba6   :  { %930 = vmatpush.bf16.msrb.mxu0 %v1148_v37 }
 0xba7   :  { %v320_v43 = vpop.permute.xlu2 %319 }
 0xba8   :  { %323 = vst.msk [vmem:[#allocation4 + $0x1c] sm:$0xf] %vm317_vm3, %v320_v43 }
 0xbaa   :  { %931 = vmatpush.bf16.msrb.mxu0 %v1147_v16 }
 0xbad   :  { %383 = vrot.lane.b32.xlu1 %v1526_v2, %s1311_s9 }
 0xbae   :  { %932 = vmatpush.bf16.msrb.mxu0 %v1146_v18 }
 0xbaf   :  { %v453_v7 = vpop.permute.xlu2 %452  ;;  %v1144_v26 = vld [vmem:[#allocation4 + $0x18] sm:$0xff] }
 0xbb0   :  { %456 = vst.msk [vmem:[#allocation3 + $0x8] sm:$0xf] %vm317_vm3, %v453_v7 }
 0xbb2   :  { %933 = vmatpush.bf16.msrb.mxu0 %v1145_v19 }
 0xbb7   :  { %v591_v8 = vpop.permute.xlu2 %590  ;;  %v1138_v44 = vld [vmem:[#allocation3 + $0x8] sm:$0xff] }
 0xbb8   :  { %594 = vst.msk [vmem:[#allocation3 + $0x10] sm:$0xf] %vm317_vm3, %v591_v8 }
 0xbbf   :  { %v729_v12 = vpop.permute.xlu2 %728  ;;  %v1139_v48 = vld [vmem:[#allocation3 + $0x10] sm:$0xff] }
 0xbc0   :  { %732 = vst.msk [vmem:[#allocation3 + $0x18] sm:$0xf] %vm317_vm3, %v729_v12 }
 0xc0f   :  { %v798_v13 = vpop.permute.xlu0 %797  ;;  %v803_v15 = vpop.permute.xlu1 %802 }
 0xc10   :  { %801 = vst.msk [vmem:[#allocation3 + $0x1c] sm:$0xf] %vm317_vm3, %v798_v13 }
 0xc11   :  { %805 = vst.msk [vmem:[#allocation4] sm:$0xf] %vm317_vm3, %v803_v15 }
 0xc17   :  { %v458_v17 = vpop.permute.xlu1 %457  ;;  %v1140_v35 = vld [vmem:[#allocation3 + $0x18] sm:$0xff] }
 0xc18   :  { %461 = vst.msk [vmem:[#allocation4 + $0x14] sm:$0xf] %vm317_vm3, %v458_v17  ;;  %v1141_v2 = vld [vmem:[#allocation4] sm:$0xff] }
 0xc19   :  { %862 = vrot.lane.b32.xlu1 %v1141_v2, %s1314_s2 }
 0xc1f   :  { %v384_v20 = vpop.permute.xlu1 %383  ;;  %v1143_v22 = vld [vmem:[#allocation4 + $0x10] sm:$0xff] }
 0xc20   :  { %387 = vst.msk [vmem:[#allocation3 + $0x4] sm:$0xf] %vm317_vm3, %v384_v20 }
 0xc21   :  { %864 = vrot.lane.b32.xlu1 %v1142_v21, %s1314_s2 }
 0xc27   :  { %v1137_v27 = vld [vmem:[#allocation3] sm:$0xff] }
 0xc29   :  { %866 = vrot.lane.b32.xlu1 %v1143_v22, %s1314_s2 }
 0xc31   :  { %868 = vrot.lane.b32.xlu1 %v1144_v26, %s1314_s2 }
 0xc8b   :  { %v863_v28 = vpop.permute.xlu1 %862 }
 0xc8c   :  { %v872_v29 = vsel %vm115_vm0, %v1137_v27, %v863_v28 }
 0xc8d   :  { %1117 = vmatmul.msk.bf16.vlgmr.msrb.gmra.mxu0 %vm261_vm2, %v872_v29 }
 0xc93   :  { %v865_v30 = vpop.permute.xlu1 %864 }
 0xc94   :  { %v875_v9 = vsel %vm115_vm0, %v1138_v44, %v865_v30 }
 0xc9b   :  { %v867_v31 = vpop.permute.xlu1 %866 }
 0xc9c   :  { %v878_v34 = vsel %vm115_vm0, %v1139_v48, %v867_v31 }
 0xc9d   :  { %1118 = vmatmul.msk.bf16.gmra.mxu0 %vm261_vm2, %v875_v9 }
 0xca3   :  { %v869_v46 = vpop.permute.xlu1 %868 }
 0xca4   :  { %v881_v36 = vsel %vm115_vm0, %v1140_v35, %v869_v46 }
 0xcad   :  { %1119 = vmatmul.msk.bf16.gmra.mxu0 %vm261_vm2, %v878_v34 }
 0xcbd   :  { %1120 = vmatmul.msk.bf16.gmra.mxu0 %vm261_vm2, %v881_v36 }
 0xd0a   :  { %v935_v41 = vpop.f32.mrf.mxu0 }
 0xd0b   :  { %v936_v45 = vadd.f32 %v1164_v40, %v935_v41 }
 0xd0d   :  { %955 = vst [vmem:[#allocation10] sm:$0xff] %v936_v45 }
 0xd12   :  { %v937_v47 = vpop.f32.mrf.mxu0 }
 0xd13   :  { %v938_v49 = vadd.f32 %v1164_v40, %v937_v47 }
 0xd15   :  { %956 = vst [vmem:[#allocation10 + $0x8] sm:$0xff] %v938_v49 }
 0xd1a   :  { %v940_v51 = vpop.f32.mrf.mxu0 }
 0xd1b   :  { %v941_v14 = vadd.f32 %v1164_v40, %v940_v51 }
 0xd1d   :  { %957 = vst [vmem:[#allocation10 + $0x10] sm:$0xff] %v941_v14 }
 0xd22   :  { %v942_v11 = vpop.f32.mrf.mxu0 }
 0xd23   :  { %v943_v53 = vadd.f32 %v1164_v40, %v942_v11 }
 0xd25   :  { %958 = vst [vmem:[#allocation10 + $0x18] sm:$0xff] %v943_v53 }
 0xd2a   :  { %v945_v25 = vpop.f32.mrf.mxu0 }
 0xd2b   :  { %v946_v24 = vadd.f32 %v1164_v40, %v945_v25 }
 0xd2d   :  { %959 = vst [vmem:[#allocation10 + $0x20] sm:$0xff] %v946_v24 }
 0xd32   :  { %v947_v33 = vpop.f32.mrf.mxu0 }
 0xd33   :  { %v948_v32 = vadd.f32 %v1164_v40, %v947_v33 }
 0xd35   :  { %960 = vst [vmem:[#allocation10 + $0x28] sm:$0xff] %v948_v32 }
 0xd3a   :  { %v950_v56 = vpop.f32.mrf.mxu0 }
 0xd3b   :  { %v951_v39 = vadd.f32 %v1164_v40, %v950_v56 }
 0xd3d   :  { %961 = vst [vmem:[#allocation10 + $0x30] sm:$0xff] %v951_v39 }
 0xd42   :  { %v952_v57 = vpop.f32.mrf.mxu0 }
 0xd43   :  { %v953_v38 = vadd.f32 %v1164_v40, %v952_v57 }
 0xd45   :  { %962 = vst [vmem:[#allocation10 + $0x38] sm:$0xff] %v953_v38 }
 0xd46   :  { %975 = dma.vmem_to_hbm [thread:$0]  %s968_s11, 1024, %s970_s14, [#allocation7], %s1308_s29, %s1308_s29, %s1309_s30  }
 0xd47   :  { %1305 = dma.done.wait [#allocation7], 1024  }
 0xd48   :  { %1306 = vsyncadd [#allocation7], 4294966272 }
 0xd49   :  { %980 = vsyncpa [#allocation6], 1 }
 0xd4a   :  { %981 = vsyncpa [#allocation9], 1 }
 0xd4b   :  { %982 = vsyncpa [#allocation7], 1 }

</bundles_post_ra>
